<compile_context>
chip_gen: v6e
topology: v6e:2x2x1
jax: 0.10.0
libtpu: 0.0.40
codegen_flags: <defaults>
</compile_context>

<pallas_src>
import functools

import jax
import jax.numpy as jnp
from jax import lax
from jax.experimental import pallas as pl
from jax.experimental.pallas import tpu as pltpu


def _round_up(v, m):
    return -(-v // m) * m


# ----------------------------- Pallas kernel -------------------------------

def _gravnet_tile_kernel(x_ref, sq_ref, nq_ref, bq_ref,
                         sT_ref, nall_ref, ball_ref, hT_ref,
                         wo_ref, bo_ref,
                         o_ref, ws_ref, *, k):
    """One query tile (TILE_Q rows) against all N candidate nodes."""
    x = x_ref[...]                 # (TQ, in_f)  query features         f32
    sq = sq_ref[...]               # (TQ, S)     query coords           f32
    nq = nq_ref[...]               # (TQ, 1)     query |s|^2            f32
    bq = bq_ref[...]               # (TQ, 1)     query graph id         i32
    sT = sT_ref[...]               # (S, N)      all coords  (lane-major, resident)
    n_all = nall_ref[...]          # (1, N)      all |s|^2              (resident)
    b_all = ball_ref[...]          # (1, N)      all graph ids          (resident)
    hT = hT_ref[...]               # (flr, N)    all features bf16 (lane-major, resident)

    tq = x.shape[0]
    in_f = x.shape[1]
    flr = hT.shape[0]
    n = sT.shape[1]
    big = jnp.float32(1e30)

    # Pairwise squared distances of the query tile against all nodes:
    # plain (TQ,S)@(S,N) MXU matmul thanks to the lane-major coord slab.
    gram = jnp.dot(sq, sT, preferred_element_type=jnp.float32)      # (TQ, N)
    d2 = jnp.maximum(nq + n_all - 2.0 * gram, 0.0)
    d2 = jnp.where(bq != b_all, big, d2)          # restrict to same graph

    col = lax.broadcasted_iota(jnp.int32, (tq, n), 1)

    # k-NN selection, statically unrolled (k small & fixed).  Each round picks
    # the argmin (self node, d2~0, is picked first — matches torch_cluster.knn),
    # writes the weighted one-hot slab into the scratch and excludes the chosen
    # column.  Only d2 is carried; NO MXU work inside this serial chain.
    for r in range(k):
        amin = jnp.argmin(d2, axis=-1, keepdims=True)   # (TQ, 1) first-index tie-break
        dmin = jnp.min(d2, axis=-1, keepdims=True)      # (TQ, 1)
        sel = col == amin                               # (TQ, N) bool
        w = jnp.exp(-10.0 * dmin)                       # (TQ, 1) (underflows to 0 on exhausted graphs)
        ws_ref[r * tq:(r + 1) * tq, :] = jnp.where(sel, w, 0.0).astype(jnp.bfloat16)
        d2 = jnp.where(sel, big, d2)                    # exclude chosen neighbour

    # All k*TQ weighted one-hot gathers in ONE batched bf16 MXU pass
    # (NT contraction; h stays lane-major).  Row block r = round-r messages.
    msgs = lax.dot_general(ws_ref[...], hT, (((1,), (1,)), ((), ())),
                           preferred_element_type=jnp.float32)       # (k*TQ, flr)

    sum_msg = msgs[0:tq, :]
    max_msg = msgs[0:tq, :]
    for r in range(1, k):
        blk = msgs[r * tq:(r + 1) * tq, :]
        sum_msg = sum_msg + blk
        max_msg = jnp.maximum(max_msg, blk)
    mean_msg = sum_msg * (1.0 / float(k))

    # lin_out([x, mean, max]) from the single fused weight, applied as three
    # static sublane slabs (offsets/sizes are multiples of 8).
    # TODO(synk): lane-concat [x|mean|max] into one (TQ, in_f+2*flr) operand for
    # a single MXU pass once unaligned minor-dim concat is verified on Mosaic.
    wo = wo_ref[...]
    out = (jnp.dot(x, wo[0:in_f, :], preferred_element_type=jnp.float32)
           + jnp.dot(mean_msg, wo[in_f:in_f + flr, :],
                     preferred_element_type=jnp.float32)
           + jnp.dot(max_msg, wo[in_f + flr:in_f + 2 * flr, :],
                     preferred_element_type=jnp.float32)
           + bo_ref[...])

    # ReLU (the GravNetBlock activation).
    o_ref[...] = jnp.maximum(out, 0.0)


# ------------------------------ wrapper -------------------------------------

def gravnet_block(x, batch, params, *, k, tile_q=128):
    """x: (N, F_in) f32, batch: (N,) int32 graph assignment."""
    ws, bs, wh, bh, wo, bo = params
    n, in_f = x.shape
    s_dim = ws.shape[1]
    flr = wh.shape[1]
    out_f = wo.shape[1]

    x = x.astype(jnp.float32)
    batch = batch.astype(jnp.int32)

    # Hoist the tiny per-node projections out of the per-tile kernel body.
    s_l = x @ ws + bs                                    # (N, S)
    h_l = x @ wh + bh                                    # (N, flr)
    nrm = jnp.sum(s_l * s_l, axis=-1, keepdims=True)     # (N, 1)

    # Query tile: multiple of 16 sublanes (bf16 scratch alignment); keep the
    # grid >= 2 steps whenever possible so the single "parallel" axis can shard
    # across v7x's two TensorCores.  Default 128 keeps the O(TQ*N) temporaries
    # + the (k*TQ, N) bf16 scratch within v7x's 64 MiB at realistic N.
    tq = _round_up(max(16, min(tile_q, n)), 16)
    if n > 16 and pl.cdiv(n, tq) < 2:
        tq = _round_up(max(16, (n + 1) // 2), 16)
    n_pad = pl.cdiv(n, tq) * tq
    pad = n_pad - n
    if pad:
        x = jnp.pad(x, ((0, pad), (0, 0)))
        s_l = jnp.pad(s_l, ((0, pad), (0, 0)))
        h_l = jnp.pad(h_l, ((0, pad), (0, 0)))
        nrm = jnp.pad(nrm, ((0, pad), (0, 0)))
        batch = jnp.pad(batch, ((0, pad),), constant_values=-1)  # never matches a real graph

    # Candidate-side slabs lane-major (N on the 128-lane axis): resident VMEM
    # is O(8*N) words per slab instead of O(128*N) from lane padding.
    sT = s_l.T                                   # (S, N)     f32
    hT = h_l.T.astype(jnp.bfloat16)              # (flr, N)   bf16
    n_row = nrm.reshape(1, n_pad)                # (1, N)
    b_row = batch.reshape(1, n_pad)              # (1, N)
    b_col = batch.reshape(n_pad, 1)              # (N, 1)

    grid = (n_pad // tq,)

    def tiled(cols):
        return pl.BlockSpec((tq, cols), lambda i: (i, 0))

    # Constant-index resident blocks.  (Their double-buffer overhead is tiny
    # after the lane-major transposition; pl.Buffered(1) is an optional trim.)
    def resident(shape):
        return pl.BlockSpec(shape, lambda i: (0, 0))

    kernel = functools.partial(_gravnet_tile_kernel, k=k)

    # Advisory cost estimate: distance Gram + the batched one-hot gather
    # dominate at real N.
    flops = (2 * n_pad * n_pad * s_dim
             + 2 * k * n_pad * n_pad * flr
             + 2 * n_pad * (in_f + 2 * flr) * out_f
             + (6 + 3 * k) * n_pad * n_pad)
    bytes_accessed = (4 * n_pad * (in_f + s_dim + 2 + out_f)
                      + 4 * n_pad * (s_dim + 2)
                      + 2 * n_pad * flr
                      + 4 * (in_f + 2 * flr + 1) * out_f)
    cost = pl.CostEstimate(flops=int(flops),
                           transcendentals=int(k * n_pad),
                           bytes_accessed=int(bytes_accessed))

    out = pl.pallas_call(
        kernel,
        out_shape=jax.ShapeDtypeStruct((n_pad, out_f), jnp.float32),
        grid=grid,
        in_specs=[
            tiled(in_f),                       # x          (query tile)
            tiled(s_dim),                      # s_l        (query tile)
            tiled(1),                          # |s|^2      (query tile)
            tiled(1),                          # batch id   (query tile)
            resident((s_dim, n_pad)),          # s_l^T      (all nodes, lane-major)
            resident((1, n_pad)),              # |s|^2      (all nodes, row)
            resident((1, n_pad)),              # batch id   (all nodes, row)
            resident((flr, n_pad)),            # h_l^T      (all nodes, lane-major, bf16)
            resident((in_f + 2 * flr, out_f)), # fused lin_out weight
            resident((1, out_f)),              # lin_out bias
        ],
        out_specs=pl.BlockSpec((tq, out_f), lambda i: (i, 0)),
        scratch_shapes=[pltpu.VMEM((k * tq, n_pad), jnp.bfloat16)],
        compiler_params=pltpu.CompilerParams(
            dimension_semantics=("parallel",),
            vmem_limit_bytes=56 * 1024 * 1024),
        cost_estimate=cost,
    )(x, s_l, nrm, b_col, sT, n_row, b_row, hT, wo, bo)

    return out[:n]


# --------------------------- pure-JAX reference ------------------------------

def gravnet_ref(x, batch, params, *, k):
    ws, bs, wh, bh, wo, bo = params
    s_l = x @ ws + bs
    h_l = x @ wh + bh
    nrm = jnp.sum(s_l * s_l, -1, keepdims=True)
    d2 = jnp.maximum(nrm + nrm.T - 2.0 * s_l @ s_l.T, 0.0)
    d2 = jnp.where(batch[:, None] != batch[None, :], 1e30, d2)
    neg_d, idx = lax.top_k(-d2, k)                    # k smallest distances
    w = jnp.exp(-10.0 * (-neg_d))                     # (N, k)
    msg = h_l[idx] * w[..., None]                     # (N, k, flr)
    mean_msg = msg.mean(axis=1)
    max_msg = msg.max(axis=1)
    feats = jnp.concatenate([x, mean_msg, max_msg], axis=-1)
    return jnp.maximum(feats @ wo + bo, 0.0)


# ------------------------------- params --------------------------------------

def init_params(key, in_features, out_features, s, flr):
    def linear(key, fan_in, fan_out):
        kw, kb = jax.random.split(key)
        bound = 1.0 / jnp.sqrt(float(fan_in))
        w = jax.random.uniform(kw, (fan_in, fan_out), jnp.float32, -bound, bound)
        b = jax.random.uniform(kb, (1, fan_out), jnp.float32, -bound, bound)
        return w, b

    k1, k2, k3 = jax.random.split(key, 3)
    ws, bs = linear(k1, in_features, s)                       # lin_s
    wh, bh = linear(k2, in_features, flr)                     # lin_h
    wo, bo = linear(k3, in_features + 2 * flr, out_features)  # lin_out (fused)
    return ws, bs, wh, bh, wo, bo


# --------------------------------- main ---------------------------------------

if __name__ == "__main__":
    # Small shapes: 2 graphs of 32 nodes each, in=16, out=32, s=4, flr=8, k=8.
    N, IN_F, OUT_F, S, FLR, K = 64, 16, 32, 4, 8, 8

    key = jax.random.PRNGKey(0)
    kx, kp = jax.random.split(key)
    x = jax.random.normal(kx, (N, IN_F), jnp.float32)
    batch = jnp.concatenate([jnp.zeros(N // 2, jnp.int32),
                             jnp.ones(N - N // 2, jnp.int32)])
    params = init_params(kp, IN_F, OUT_F, S, FLR)

    # tile_q=32 exercises the 2-step query-tile grid at this toy N.
    out = gravnet_block(x, batch, params, k=K, tile_q=32)
    out = jax.block_until_ready(out)

    ref = gravnet_ref(x, batch, params, k=K)
    assert out.shape == (N, OUT_F)
    err = float(jnp.max(jnp.abs(out - ref)))
    # bf16 gather operands (h_l + one-hot weights) quantize the messages at the
    # ~3e-3 relative level; tolerance relaxed accordingly (neighbour selection
    # itself stays f32-exact).
    assert jnp.allclose(out, ref, atol=2e-2, rtol=2e-2), err

    print("KERNEL_OK")
</pallas_src>

<mosaic_0001>
module attributes {stable_mosaic.version = 11 : i64} {
  func.func @_gravnet_tile_kernel(%arg0: i32, %arg1: memref<32x16xf32, #tpu.memory_space<vmem>>, %arg2: memref<32x4xf32, #tpu.memory_space<vmem>>, %arg3: memref<32x1xf32, #tpu.memory_space<vmem>>, %arg4: memref<32x1xi32, #tpu.memory_space<vmem>>, %arg5: memref<4x64xf32, #tpu.memory_space<vmem>>, %arg6: memref<1x64xf32, #tpu.memory_space<vmem>>, %arg7: memref<1x64xi32, #tpu.memory_space<vmem>>, %arg8: memref<8x64xbf16, #tpu.memory_space<vmem>>, %arg9: memref<32x32xf32, #tpu.memory_space<vmem>>, %arg10: memref<1x32xf32, #tpu.memory_space<vmem>>, %arg11: memref<32x32xf32, #tpu.memory_space<vmem>>, %arg12: memref<256x64xbf16, #tpu.memory_space<vmem>>) attributes {dimension_semantics = [#tpu.dimension_semantics<parallel>], iteration_bounds = array<i64: 2>, scalar_prefetch = 0 : i64, scratch_operands = 1 : i64, tpu.core_type = #tpu.core_type<tc>, window_params = [{transform_indices = @transform_0, window_bounds = array<i64: 32, 16>}, {transform_indices = @transform_1, window_bounds = array<i64: 32, 4>}, {transform_indices = @transform_2, window_bounds = array<i64: 32, 1>}, {transform_indices = @transform_3, window_bounds = array<i64: 32, 1>}, {pipeline_mode = #tpu.pipeline_mode<synchronous>, transform_indices = @transform_4, window_bounds = array<i64: 4, 64>}, {pipeline_mode = #tpu.pipeline_mode<synchronous>, transform_indices = @transform_5, window_bounds = array<i64: 1, 64>}, {pipeline_mode = #tpu.pipeline_mode<synchronous>, transform_indices = @transform_6, window_bounds = array<i64: 1, 64>}, {pipeline_mode = #tpu.pipeline_mode<synchronous>, transform_indices = @transform_7, window_bounds = array<i64: 8, 64>}, {pipeline_mode = #tpu.pipeline_mode<synchronous>, transform_indices = @transform_8, window_bounds = array<i64: 32, 32>}, {pipeline_mode = #tpu.pipeline_mode<synchronous>, transform_indices = @transform_9, window_bounds = array<i64: 1, 32>}, {transform_indices = @transform_10, window_bounds = array<i64: 32, 32>}]} {
    %c0 = arith.constant 0 : index
    %c0_0 = arith.constant 0 : index
    %0 = vector.load %arg1[%c0, %c0_0] : memref<32x16xf32, #tpu.memory_space<vmem>>, vector<32x16xf32>
    %c0_1 = arith.constant 0 : index
    %c0_2 = arith.constant 0 : index
    %1 = vector.load %arg2[%c0_1, %c0_2] : memref<32x4xf32, #tpu.memory_space<vmem>>, vector<32x4xf32>
    %c0_3 = arith.constant 0 : index
    %c0_4 = arith.constant 0 : index
    %2 = vector.load %arg3[%c0_3, %c0_4] : memref<32x1xf32, #tpu.memory_space<vmem>>, vector<32x1xf32>
    %c0_5 = arith.constant 0 : index
    %c0_6 = arith.constant 0 : index
    %3 = vector.load %arg4[%c0_5, %c0_6] : memref<32x1xi32, #tpu.memory_space<vmem>>, vector<32x1xi32>
    %c0_7 = arith.constant 0 : index
    %c0_8 = arith.constant 0 : index
    %4 = vector.load %arg5[%c0_7, %c0_8] : memref<4x64xf32, #tpu.memory_space<vmem>>, vector<4x64xf32>
    %c0_9 = arith.constant 0 : index
    %c0_10 = arith.constant 0 : index
    %5 = vector.load %arg6[%c0_9, %c0_10] : memref<1x64xf32, #tpu.memory_space<vmem>>, vector<1x64xf32>
    %c0_11 = arith.constant 0 : index
    %c0_12 = arith.constant 0 : index
    %6 = vector.load %arg7[%c0_11, %c0_12] : memref<1x64xi32, #tpu.memory_space<vmem>>, vector<1x64xi32>
    %c0_13 = arith.constant 0 : index
    %c0_14 = arith.constant 0 : index
    %7 = vector.load %arg8[%c0_13, %c0_14] : memref<8x64xbf16, #tpu.memory_space<vmem>>, vector<8x64xbf16>
    %cst = arith.constant dense<0.000000e+00> : vector<32x64xf32>
    %8 = tpu.matmul %1, %4, %cst {dimension_numbers = #tpu.dot_dimension_numbers<[1], [0], [0], [1], [0, 0, 1, 1], [], []>} : vector<32x4xf32>, vector<4x64xf32>, vector<32x64xf32> -> vector<32x64xf32>
    %9 = vector.broadcast %2 : vector<32x1xf32> to vector<32x64xf32>
    %10 = vector.broadcast %5 : vector<1x64xf32> to vector<32x64xf32>
    %11 = arith.addf %9, %10 : vector<32x64xf32>
    %cst_15 = arith.constant 2.000000e+00 : f32
    %12 = vector.broadcast %cst_15 : f32 to vector<32x64xf32>
    %13 = arith.mulf %12, %8 : vector<32x64xf32>
    %14 = arith.subf %11, %13 : vector<32x64xf32>
    %cst_16 = arith.constant 0.000000e+00 : f32
    %15 = vector.broadcast %cst_16 : f32 to vector<32x64xf32>
    %16 = arith.maximumf %14, %15 : vector<32x64xf32>
    %17 = vector.broadcast %3 : vector<32x1xi32> to vector<32x64xi32>
    %18 = vector.broadcast %6 : vector<1x64xi32> to vector<32x64xi32>
    %19 = arith.cmpi ne, %17, %18 : vector<32x64xi32>
    %cst_17 = arith.constant 1.000000e+30 : f32
    %20 = vector.broadcast %cst_17 : f32 to vector<32x64xf32>
    %21 = arith.select %19, %20, %16 : vector<32x64xi1>, vector<32x64xf32>
    %22 = tpu.iota {dimensions = array<i32: 1>} : vector<32x64xi32>
    %23 = tpu.reduce_index %21 {axis = 1 : i32, kind = #tpu.reduction_kind<arg_min>} : vector<32x64xf32> -> vector<32xi32>
    %24 = vector.shape_cast %23 : vector<32xi32> to vector<32x1xi32>
    %cst_18 = arith.constant dense<0x7F800000> : vector<32xf32>
    %25 = vector.multi_reduction <minimumf>, %21, %cst_18 [1] : vector<32x64xf32> to vector<32xf32>
    %26 = vector.shape_cast %25 : vector<32xf32> to vector<32x1xf32>
    %27 = vector.broadcast %24 : vector<32x1xi32> to vector<32x64xi32>
    %28 = arith.cmpi eq, %22, %27 : vector<32x64xi32>
    %cst_19 = arith.constant -1.000000e+01 : f32
    %29 = vector.broadcast %cst_19 : f32 to vector<32x1xf32>
    %30 = arith.mulf %29, %26 : vector<32x1xf32>
    %31 = math.exp %30 : vector<32x1xf32>
    %cst_20 = arith.constant 0.000000e+00 : f32
    %32 = vector.shape_cast %31 : vector<32x1xf32> to vector<32x1xf32>
    %33 = vector.broadcast %32 : vector<32x1xf32> to vector<32x64xf32>
    %34 = vector.broadcast %cst_20 : f32 to vector<32x64xf32>
    %35 = arith.select %28, %33, %34 : vector<32x64xi1>, vector<32x64xf32>
    %36 = arith.truncf %35 : vector<32x64xf32> to vector<32x64xbf16>
    %c0_21 = arith.constant 0 : index
    %c0_22 = arith.constant 0 : index
    %37 = vector.load %arg12[%c0_21, %c0_22] : memref<256x64xbf16, #tpu.memory_space<vmem>>, vector<32x64xbf16>
    tpu.vector_store %arg12[%c0_21, %c0_22], %36 {strides = array<i32>} : memref<256x64xbf16, #tpu.memory_space<vmem>>, vector<32x64xbf16>,
    %cst_23 = arith.constant 1.000000e+30 : f32
    %38 = vector.broadcast %cst_23 : f32 to vector<32x64xf32>
    %39 = arith.select %28, %38, %21 : vector<32x64xi1>, vector<32x64xf32>
    %40 = tpu.reduce_index %39 {axis = 1 : i32, kind = #tpu.reduction_kind<arg_min>} : vector<32x64xf32> -> vector<32xi32>
    %41 = vector.shape_cast %40 : vector<32xi32> to vector<32x1xi32>
    %cst_24 = arith.constant dense<0x7F800000> : vector<32xf32>
    %42 = vector.multi_reduction <minimumf>, %39, %cst_24 [1] : vector<32x64xf32> to vector<32xf32>
    %43 = vector.shape_cast %42 : vector<32xf32> to vector<32x1xf32>
    %44 = vector.broadcast %41 : vector<32x1xi32> to vector<32x64xi32>
    %45 = arith.cmpi eq, %22, %44 : vector<32x64xi32>
    %cst_25 = arith.constant -1.000000e+01 : f32
    %46 = vector.broadcast %cst_25 : f32 to vector<32x1xf32>
    %47 = arith.mulf %46, %43 : vector<32x1xf32>
    %48 = math.exp %47 : vector<32x1xf32>
    %cst_26 = arith.constant 0.000000e+00 : f32
    %49 = vector.shape_cast %48 : vector<32x1xf32> to vector<32x1xf32>
    %50 = vector.broadcast %49 : vector<32x1xf32> to vector<32x64xf32>
    %51 = vector.broadcast %cst_26 : f32 to vector<32x64xf32>
    %52 = arith.select %45, %50, %51 : vector<32x64xi1>, vector<32x64xf32>
    %53 = arith.truncf %52 : vector<32x64xf32> to vector<32x64xbf16>
    %c32 = arith.constant 32 : index
    %c0_27 = arith.constant 0 : index
    %54 = vector.load %arg12[%c32, %c0_27] : memref<256x64xbf16, #tpu.memory_space<vmem>>, vector<32x64xbf16>
    tpu.vector_store %arg12[%c32, %c0_27], %53 {strides = array<i32>} : memref<256x64xbf16, #tpu.memory_space<vmem>>, vector<32x64xbf16>,
    %cst_28 = arith.constant 1.000000e+30 : f32
    %55 = vector.broadcast %cst_28 : f32 to vector<32x64xf32>
    %56 = arith.select %45, %55, %39 : vector<32x64xi1>, vector<32x64xf32>
    %57 = tpu.reduce_index %56 {axis = 1 : i32, kind = #tpu.reduction_kind<arg_min>} : vector<32x64xf32> -> vector<32xi32>
    %58 = vector.shape_cast %57 : vector<32xi32> to vector<32x1xi32>
    %cst_29 = arith.constant dense<0x7F800000> : vector<32xf32>
    %59 = vector.multi_reduction <minimumf>, %56, %cst_29 [1] : vector<32x64xf32> to vector<32xf32>
    %60 = vector.shape_cast %59 : vector<32xf32> to vector<32x1xf32>
    %61 = vector.broadcast %58 : vector<32x1xi32> to vector<32x64xi32>
    %62 = arith.cmpi eq, %22, %61 : vector<32x64xi32>
    %cst_30 = arith.constant -1.000000e+01 : f32
    %63 = vector.broadcast %cst_30 : f32 to vector<32x1xf32>
    %64 = arith.mulf %63, %60 : vector<32x1xf32>
    %65 = math.exp %64 : vector<32x1xf32>
    %cst_31 = arith.constant 0.000000e+00 : f32
    %66 = vector.shape_cast %65 : vector<32x1xf32> to vector<32x1xf32>
    %67 = vector.broadcast %66 : vector<32x1xf32> to vector<32x64xf32>
    %68 = vector.broadcast %cst_31 : f32 to vector<32x64xf32>
    %69 = arith.select %62, %67, %68 : vector<32x64xi1>, vector<32x64xf32>
    %70 = arith.truncf %69 : vector<32x64xf32> to vector<32x64xbf16>
    %c64 = arith.constant 64 : index
    %c0_32 = arith.constant 0 : index
    %71 = vector.load %arg12[%c64, %c0_32] : memref<256x64xbf16, #tpu.memory_space<vmem>>, vector<32x64xbf16>
    tpu.vector_store %arg12[%c64, %c0_32], %70 {strides = array<i32>} : memref<256x64xbf16, #tpu.memory_space<vmem>>, vector<32x64xbf16>,
    %cst_33 = arith.constant 1.000000e+30 : f32
    %72 = vector.broadcast %cst_33 : f32 to vector<32x64xf32>
    %73 = arith.select %62, %72, %56 : vector<32x64xi1>, vector<32x64xf32>
    %74 = tpu.reduce_index %73 {axis = 1 : i32, kind = #tpu.reduction_kind<arg_min>} : vector<32x64xf32> -> vector<32xi32>
    %75 = vector.shape_cast %74 : vector<32xi32> to vector<32x1xi32>
    %cst_34 = arith.constant dense<0x7F800000> : vector<32xf32>
    %76 = vector.multi_reduction <minimumf>, %73, %cst_34 [1] : vector<32x64xf32> to vector<32xf32>
    %77 = vector.shape_cast %76 : vector<32xf32> to vector<32x1xf32>
    %78 = vector.broadcast %75 : vector<32x1xi32> to vector<32x64xi32>
    %79 = arith.cmpi eq, %22, %78 : vector<32x64xi32>
    %cst_35 = arith.constant -1.000000e+01 : f32
    %80 = vector.broadcast %cst_35 : f32 to vector<32x1xf32>
    %81 = arith.mulf %80, %77 : vector<32x1xf32>
    %82 = math.exp %81 : vector<32x1xf32>
    %cst_36 = arith.constant 0.000000e+00 : f32
    %83 = vector.shape_cast %82 : vector<32x1xf32> to vector<32x1xf32>
    %84 = vector.broadcast %83 : vector<32x1xf32> to vector<32x64xf32>
    %85 = vector.broadcast %cst_36 : f32 to vector<32x64xf32>
    %86 = arith.select %79, %84, %85 : vector<32x64xi1>, vector<32x64xf32>
    %87 = arith.truncf %86 : vector<32x64xf32> to vector<32x64xbf16>
    %c96 = arith.constant 96 : index
    %c0_37 = arith.constant 0 : index
    %88 = vector.load %arg12[%c96, %c0_37] : memref<256x64xbf16, #tpu.memory_space<vmem>>, vector<32x64xbf16>
    tpu.vector_store %arg12[%c96, %c0_37], %87 {strides = array<i32>} : memref<256x64xbf16, #tpu.memory_space<vmem>>, vector<32x64xbf16>,
    %cst_38 = arith.constant 1.000000e+30 : f32
    %89 = vector.broadcast %cst_38 : f32 to vector<32x64xf32>
    %90 = arith.select %79, %89, %73 : vector<32x64xi1>, vector<32x64xf32>
    %91 = tpu.reduce_index %90 {axis = 1 : i32, kind = #tpu.reduction_kind<arg_min>} : vector<32x64xf32> -> vector<32xi32>
    %92 = vector.shape_cast %91 : vector<32xi32> to vector<32x1xi32>
    %cst_39 = arith.constant dense<0x7F800000> : vector<32xf32>
    %93 = vector.multi_reduction <minimumf>, %90, %cst_39 [1] : vector<32x64xf32> to vector<32xf32>
    %94 = vector.shape_cast %93 : vector<32xf32> to vector<32x1xf32>
    %95 = vector.broadcast %92 : vector<32x1xi32> to vector<32x64xi32>
    %96 = arith.cmpi eq, %22, %95 : vector<32x64xi32>
    %cst_40 = arith.constant -1.000000e+01 : f32
    %97 = vector.broadcast %cst_40 : f32 to vector<32x1xf32>
    %98 = arith.mulf %97, %94 : vector<32x1xf32>
    %99 = math.exp %98 : vector<32x1xf32>
    %cst_41 = arith.constant 0.000000e+00 : f32
    %100 = vector.shape_cast %99 : vector<32x1xf32> to vector<32x1xf32>
    %101 = vector.broadcast %100 : vector<32x1xf32> to vector<32x64xf32>
    %102 = vector.broadcast %cst_41 : f32 to vector<32x64xf32>
    %103 = arith.select %96, %101, %102 : vector<32x64xi1>, vector<32x64xf32>
    %104 = arith.truncf %103 : vector<32x64xf32> to vector<32x64xbf16>
    %c128 = arith.constant 128 : index
    %c0_42 = arith.constant 0 : index
    %105 = vector.load %arg12[%c128, %c0_42] : memref<256x64xbf16, #tpu.memory_space<vmem>>, vector<32x64xbf16>
    tpu.vector_store %arg12[%c128, %c0_42], %104 {strides = array<i32>} : memref<256x64xbf16, #tpu.memory_space<vmem>>, vector<32x64xbf16>,
    %cst_43 = arith.constant 1.000000e+30 : f32
    %106 = vector.broadcast %cst_43 : f32 to vector<32x64xf32>
    %107 = arith.select %96, %106, %90 : vector<32x64xi1>, vector<32x64xf32>
    %108 = tpu.reduce_index %107 {axis = 1 : i32, kind = #tpu.reduction_kind<arg_min>} : vector<32x64xf32> -> vector<32xi32>
    %109 = vector.shape_cast %108 : vector<32xi32> to vector<32x1xi32>
    %cst_44 = arith.constant dense<0x7F800000> : vector<32xf32>
    %110 = vector.multi_reduction <minimumf>, %107, %cst_44 [1] : vector<32x64xf32> to vector<32xf32>
    %111 = vector.shape_cast %110 : vector<32xf32> to vector<32x1xf32>
    %112 = vector.broadcast %109 : vector<32x1xi32> to vector<32x64xi32>
    %113 = arith.cmpi eq, %22, %112 : vector<32x64xi32>
    %cst_45 = arith.constant -1.000000e+01 : f32
    %114 = vector.broadcast %cst_45 : f32 to vector<32x1xf32>
    %115 = arith.mulf %114, %111 : vector<32x1xf32>
    %116 = math.exp %115 : vector<32x1xf32>
    %cst_46 = arith.constant 0.000000e+00 : f32
    %117 = vector.shape_cast %116 : vector<32x1xf32> to vector<32x1xf32>
    %118 = vector.broadcast %117 : vector<32x1xf32> to vector<32x64xf32>
    %119 = vector.broadcast %cst_46 : f32 to vector<32x64xf32>
    %120 = arith.select %113, %118, %119 : vector<32x64xi1>, vector<32x64xf32>
    %121 = arith.truncf %120 : vector<32x64xf32> to vector<32x64xbf16>
    %c160 = arith.constant 160 : index
    %c0_47 = arith.constant 0 : index
    %122 = vector.load %arg12[%c160, %c0_47] : memref<256x64xbf16, #tpu.memory_space<vmem>>, vector<32x64xbf16>
    tpu.vector_store %arg12[%c160, %c0_47], %121 {strides = array<i32>} : memref<256x64xbf16, #tpu.memory_space<vmem>>, vector<32x64xbf16>,
    %cst_48 = arith.constant 1.000000e+30 : f32
    %123 = vector.broadcast %cst_48 : f32 to vector<32x64xf32>
    %124 = arith.select %113, %123, %107 : vector<32x64xi1>, vector<32x64xf32>
    %125 = tpu.reduce_index %124 {axis = 1 : i32, kind = #tpu.reduction_kind<arg_min>} : vector<32x64xf32> -> vector<32xi32>
    %126 = vector.shape_cast %125 : vector<32xi32> to vector<32x1xi32>
    %cst_49 = arith.constant dense<0x7F800000> : vector<32xf32>
    %127 = vector.multi_reduction <minimumf>, %124, %cst_49 [1] : vector<32x64xf32> to vector<32xf32>
    %128 = vector.shape_cast %127 : vector<32xf32> to vector<32x1xf32>
    %129 = vector.broadcast %126 : vector<32x1xi32> to vector<32x64xi32>
    %130 = arith.cmpi eq, %22, %129 : vector<32x64xi32>
    %cst_50 = arith.constant -1.000000e+01 : f32
    %131 = vector.broadcast %cst_50 : f32 to vector<32x1xf32>
    %132 = arith.mulf %131, %128 : vector<32x1xf32>
    %133 = math.exp %132 : vector<32x1xf32>
    %cst_51 = arith.constant 0.000000e+00 : f32
    %134 = vector.shape_cast %133 : vector<32x1xf32> to vector<32x1xf32>
    %135 = vector.broadcast %134 : vector<32x1xf32> to vector<32x64xf32>
    %136 = vector.broadcast %cst_51 : f32 to vector<32x64xf32>
    %137 = arith.select %130, %135, %136 : vector<32x64xi1>, vector<32x64xf32>
    %138 = arith.truncf %137 : vector<32x64xf32> to vector<32x64xbf16>
    %c192 = arith.constant 192 : index
    %c0_52 = arith.constant 0 : index
    %139 = vector.load %arg12[%c192, %c0_52] : memref<256x64xbf16, #tpu.memory_space<vmem>>, vector<32x64xbf16>
    tpu.vector_store %arg12[%c192, %c0_52], %138 {strides = array<i32>} : memref<256x64xbf16, #tpu.memory_space<vmem>>, vector<32x64xbf16>,
    %cst_53 = arith.constant 1.000000e+30 : f32
    %140 = vector.broadcast %cst_53 : f32 to vector<32x64xf32>
    %141 = arith.select %130, %140, %124 : vector<32x64xi1>, vector<32x64xf32>
    %142 = tpu.reduce_index %141 {axis = 1 : i32, kind = #tpu.reduction_kind<arg_min>} : vector<32x64xf32> -> vector<32xi32>
    %143 = vector.shape_cast %142 : vector<32xi32> to vector<32x1xi32>
    %cst_54 = arith.constant dense<0x7F800000> : vector<32xf32>
    %144 = vector.multi_reduction <minimumf>, %141, %cst_54 [1] : vector<32x64xf32> to vector<32xf32>
    %145 = vector.shape_cast %144 : vector<32xf32> to vector<32x1xf32>
    %146 = vector.broadcast %143 : vector<32x1xi32> to vector<32x64xi32>
    %147 = arith.cmpi eq, %22, %146 : vector<32x64xi32>
    %cst_55 = arith.constant -1.000000e+01 : f32
    %148 = vector.broadcast %cst_55 : f32 to vector<32x1xf32>
    %149 = arith.mulf %148, %145 : vector<32x1xf32>
    %150 = math.exp %149 : vector<32x1xf32>
    %cst_56 = arith.constant 0.000000e+00 : f32
    %151 = vector.shape_cast %150 : vector<32x1xf32> to vector<32x1xf32>
    %152 = vector.broadcast %151 : vector<32x1xf32> to vector<32x64xf32>
    %153 = vector.broadcast %cst_56 : f32 to vector<32x64xf32>
    %154 = arith.select %147, %152, %153 : vector<32x64xi1>, vector<32x64xf32>
    %155 = arith.truncf %154 : vector<32x64xf32> to vector<32x64xbf16>
    %c224 = arith.constant 224 : index
    %c0_57 = arith.constant 0 : index
    %156 = vector.load %arg12[%c224, %c0_57] : memref<256x64xbf16, #tpu.memory_space<vmem>>, vector<32x64xbf16>
    tpu.vector_store %arg12[%c224, %c0_57], %155 {strides = array<i32>} : memref<256x64xbf16, #tpu.memory_space<vmem>>, vector<32x64xbf16>,
    %c0_58 = arith.constant 0 : index
    %c0_59 = arith.constant 0 : index
    %157 = vector.load %arg12[%c0_58, %c0_59] : memref<256x64xbf16, #tpu.memory_space<vmem>>, vector<256x64xbf16>
    %cst_60 = arith.constant dense<0.000000e+00> : vector<256x8xf32>
    %158 = tpu.matmul %157, %7, %cst_60 {dimension_numbers = #tpu.dot_dimension_numbers<[1], [1], [0], [0], [0, 0, 1, 0], [], []>} : vector<256x64xbf16>, vector<8x64xbf16>, vector<256x8xf32> -> vector<256x8xf32>
    %159 = vector.extract_strided_slice %158 {offsets = [0, 0], sizes = [32, 8], strides = [1, 1]} : vector<256x8xf32> to vector<32x8xf32>
    %160 = vector.extract_strided_slice %158 {offsets = [0, 0], sizes = [32, 8], strides = [1, 1]} : vector<256x8xf32> to vector<32x8xf32>
    %161 = vector.extract_strided_slice %158 {offsets = [32, 0], sizes = [32, 8], strides = [1, 1]} : vector<256x8xf32> to vector<32x8xf32>
    %162 = arith.addf %159, %161 : vector<32x8xf32>
    %163 = arith.maximumf %160, %161 : vector<32x8xf32>
    %164 = vector.extract_strided_slice %158 {offsets = [64, 0], sizes = [32, 8], strides = [1, 1]} : vector<256x8xf32> to vector<32x8xf32>
    %165 = arith.addf %162, %164 : vector<32x8xf32>
    %166 = arith.maximumf %163, %164 : vector<32x8xf32>
    %167 = vector.extract_strided_slice %158 {offsets = [96, 0], sizes = [32, 8], strides = [1, 1]} : vector<256x8xf32> to vector<32x8xf32>
    %168 = arith.addf %165, %167 : vector<32x8xf32>
    %169 = arith.maximumf %166, %167 : vector<32x8xf32>
    %170 = vector.extract_strided_slice %158 {offsets = [128, 0], sizes = [32, 8], strides = [1, 1]} : vector<256x8xf32> to vector<32x8xf32>
    %171 = arith.addf %168, %170 : vector<32x8xf32>
    %172 = arith.maximumf %169, %170 : vector<32x8xf32>
    %173 = vector.extract_strided_slice %158 {offsets = [160, 0], sizes = [32, 8], strides = [1, 1]} : vector<256x8xf32> to vector<32x8xf32>
    %174 = arith.addf %171, %173 : vector<32x8xf32>
    %175 = arith.maximumf %172, %173 : vector<32x8xf32>
    %176 = vector.extract_strided_slice %158 {offsets = [192, 0], sizes = [32, 8], strides = [1, 1]} : vector<256x8xf32> to vector<32x8xf32>
    %177 = arith.addf %174, %176 : vector<32x8xf32>
    %178 = arith.maximumf %175, %176 : vector<32x8xf32>
    %179 = vector.extract_strided_slice %158 {offsets = [224, 0], sizes = [32, 8], strides = [1, 1]} : vector<256x8xf32> to vector<32x8xf32>
    %180 = arith.addf %177, %179 : vector<32x8xf32>
    %181 = arith.maximumf %178, %179 : vector<32x8xf32>
    %cst_61 = arith.constant 1.250000e-01 : f32
    %182 = vector.broadcast %cst_61 : f32 to vector<32x8xf32>
    %183 = arith.mulf %180, %182 : vector<32x8xf32>
    %c0_62 = arith.constant 0 : index
    %c0_63 = arith.constant 0 : index
    %184 = vector.load %arg9[%c0_62, %c0_63] : memref<32x32xf32, #tpu.memory_space<vmem>>, vector<32x32xf32>
    %185 = vector.extract_strided_slice %184 {offsets = [0, 0], sizes = [16, 32], strides = [1, 1]} : vector<32x32xf32> to vector<16x32xf32>
    %cst_64 = arith.constant dense<0.000000e+00> : vector<32x32xf32>
    %186 = tpu.matmul %0, %185, %cst_64 {dimension_numbers = #tpu.dot_dimension_numbers<[1], [0], [0], [1], [0, 0, 1, 1], [], []>} : vector<32x16xf32>, vector<16x32xf32>, vector<32x32xf32> -> vector<32x32xf32>
    %187 = vector.extract_strided_slice %184 {offsets = [16, 0], sizes = [8, 32], strides = [1, 1]} : vector<32x32xf32> to vector<8x32xf32>
    %cst_65 = arith.constant dense<0.000000e+00> : vector<32x32xf32>
    %188 = tpu.matmul %183, %187, %cst_65 {dimension_numbers = #tpu.dot_dimension_numbers<[1], [0], [0], [1], [0, 0, 1, 1], [], []>} : vector<32x8xf32>, vector<8x32xf32>, vector<32x32xf32> -> vector<32x32xf32>
    %189 = arith.addf %186, %188 : vector<32x32xf32>
    %190 = vector.extract_strided_slice %184 {offsets = [24, 0], sizes = [8, 32], strides = [1, 1]} : vector<32x32xf32> to vector<8x32xf32>
    %cst_66 = arith.constant dense<0.000000e+00> : vector<32x32xf32>
    %191 = tpu.matmul %181, %190, %cst_66 {dimension_numbers = #tpu.dot_dimension_numbers<[1], [0], [0], [1], [0, 0, 1, 1], [], []>} : vector<32x8xf32>, vector<8x32xf32>, vector<32x32xf32> -> vector<32x32xf32>
    %192 = arith.addf %189, %191 : vector<32x32xf32>
    %c0_67 = arith.constant 0 : index
    %c0_68 = arith.constant 0 : index
    %193 = vector.load %arg10[%c0_67, %c0_68] : memref<1x32xf32, #tpu.memory_space<vmem>>, vector<1x32xf32>
    %194 = vector.broadcast %193 : vector<1x32xf32> to vector<32x32xf32>
    %195 = arith.addf %192, %194 : vector<32x32xf32>
    %cst_69 = arith.constant 0.000000e+00 : f32
    %196 = vector.broadcast %cst_69 : f32 to vector<32x32xf32>
    %197 = arith.maximumf %195, %196 : vector<32x32xf32>
    %c0_70 = arith.constant 0 : index
    %c0_71 = arith.constant 0 : index
    %198 = vector.load %arg11[%c0_70, %c0_71] : memref<32x32xf32, #tpu.memory_space<vmem>>, vector<32x32xf32>
    tpu.vector_store %arg11[%c0_70, %c0_71], %197 {strides = array<i32>} : memref<32x32xf32, #tpu.memory_space<vmem>>, vector<32x32xf32>,
    return
  }
  func.func @transform_0(%arg0: i32) -> (i32, i32) {
    %c0_i32 = arith.constant 0 : i32
    %c0_i32_0 = arith.constant 0 : i32
    return %arg0, %c0_i32 : i32, i32
  }
  func.func @transform_1(%arg0: i32) -> (i32, i32) {
    %c0_i32 = arith.constant 0 : i32
    %c0_i32_0 = arith.constant 0 : i32
    return %arg0, %c0_i32 : i32, i32
  }
  func.func @transform_2(%arg0: i32) -> (i32, i32) {
    %c0_i32 = arith.constant 0 : i32
    %c0_i32_0 = arith.constant 0 : i32
    return %arg0, %c0_i32 : i32, i32
  }
  func.func @transform_3(%arg0: i32) -> (i32, i32) {
    %c0_i32 = arith.constant 0 : i32
    %c0_i32_0 = arith.constant 0 : i32
    return %arg0, %c0_i32 : i32, i32
  }
  func.func @transform_4(%arg0: i32) -> (i32, i32) {
    %c0_i32 = arith.constant 0 : i32
    %c0_i32_0 = arith.constant 0 : i32
    %c0_i32_1 = arith.constant 0 : i32
    return %c0_i32, %c0_i32_0 : i32, i32
  }
  func.func @transform_5(%arg0: i32) -> (i32, i32) {
    %c0_i32 = arith.constant 0 : i32
    %c0_i32_0 = arith.constant 0 : i32
    %c0_i32_1 = arith.constant 0 : i32
    return %c0_i32, %c0_i32_0 : i32, i32
  }
  func.func @transform_6(%arg0: i32) -> (i32, i32) {
    %c0_i32 = arith.constant 0 : i32
    %c0_i32_0 = arith.constant 0 : i32
    %c0_i32_1 = arith.constant 0 : i32
    return %c0_i32, %c0_i32_0 : i32, i32
  }
  func.func @transform_7(%arg0: i32) -> (i32, i32) {
    %c0_i32 = arith.constant 0 : i32
    %c0_i32_0 = arith.constant 0 : i32
    %c0_i32_1 = arith.constant 0 : i32
    return %c0_i32, %c0_i32_0 : i32, i32
  }
  func.func @transform_8(%arg0: i32) -> (i32, i32) {
    %c0_i32 = arith.constant 0 : i32
    %c0_i32_0 = arith.constant 0 : i32
    %c0_i32_1 = arith.constant 0 : i32
    return %c0_i32, %c0_i32_0 : i32, i32
  }
  func.func @transform_9(%arg0: i32) -> (i32, i32) {
    %c0_i32 = arith.constant 0 : i32
    %c0_i32_0 = arith.constant 0 : i32
    %c0_i32_1 = arith.constant 0 : i32
    return %c0_i32, %c0_i32_0 : i32, i32
  }
  func.func @transform_10(%arg0: i32) -> (i32, i32) {
    %c0_i32 = arith.constant 0 : i32
    %c0_i32_0 = arith.constant 0 : i32
    return %arg0, %c0_i32 : i32, i32
  }
}

</mosaic_0001>

<bundles_post_ra>
// kernel: tpu_custom_call.1
= control target key start
LH: loop header
LB: loop body
LE: loop exit
PB: predicated region body
PF: predicated region fallthrough
CT: control target
= control target key end

     0   :  { %s2325_s13 = smov 0   ;;  %s2922_s0 = inlined_call_operand.vmem [shape: f32[64,16], index: 0, kind: input, shape index: {}]   ;;  %s2923_s1 = inlined_call_operand.vmem [shape: f32[64,4], index: 1, kind: input, shape index: {}]   ;;  %s2924_s2 = inlined_call_operand.vmem [shape: f32[64,1], index: 2, kind: input, shape index: {}]   ;;  %s2925_s3 = inlined_call_operand.vmem [shape: s32[64,1], index: 3, kind: input, shape index: {}]   ;;  %s2926_s4 = inlined_call_operand.vmem [shape: f32[4,64], index: 4, kind: input, shape index: {}]   ;;  %s2927_s5 = inlined_call_operand.vmem [shape: f32[1,64], index: 5, kind: input, shape index: {}]   ;;  %s2928_s6 = inlined_call_operand.vmem [shape: s32[1,64], index: 6, kind: input, shape index: {}]   ;;  %s2929_s7 = inlined_call_operand.vmem [shape: bf16[8,64], index: 7, kind: input, shape index: {}]   ;;  %s2930_s8 = inlined_call_operand.vmem [shape: f32[32,32], index: 8, kind: input, shape index: {}]   ;;  %s2931_s9 = inlined_call_operand.vmem [shape: f32[1,32], index: 9, kind: input, shape index: {}]   ;;  %s2932_s10 = inlined_call_operand.vmem [shape: f32[64,32], index: 10, kind: output, shape index: {}]  }
   0x1 LB: > { %s1927_s14 = sadd.s32 4294967295, %s2267_s13   ;;  %p1931_p0 = scmp.ge.s32.totalorder %s2267_s13, 1  ;;  %s2267_s13 = sphi %s2325_s13, %s20_s13  }
   0x2   : > { %p346_p1 = scmp.lt.s32.totalorder %s2267_s13, 3 }
   0x4   : > { %p347_p2 = pnand %p1931_p0, %p346_p1 }
   0x5   : > { %s1932_s17 = sshll.u32 (!%p347_p2), %s1927_s14, 2 }
   0x6   : > { %350 = sbr.rel (%p347_p2) target bundleno = 1806 (0x70e), region = 60  ;;  %p400_p3 = scmp.lt.s32.totalorder (!%p347_p2), %s1932_s17, 7 }
   0xb   : > { %v446_v0 = vld [vmem:[%s2926_s4] sm:$0xf]  ;;  %vm463_vm0 = vcmask 1043456   ;;  %v2269_v1 = vmov 0   ;;  %s2962_s17 = smov (!%p400_p3, %s1932_s17), 7  ;;  %vm450_vm1 = vcmask 31744   ;;  %v618_v52 = vlaneseq }
   0xc   : > { %2098 = vmatprep.subr.msk.mxu0 %vm463_vm0, %v446_v0  ;;  %2179 = vset.pattern.permute.xlu0 %v2269_v1  ;;  %s2336_s18 = sshll.u32 %s2962_s17, 3  ;;  %v1947_v16 = vld [vmem:[%s2927_s5] ss:$0 sm:$0xff]  ;;  %vm620_vm2 = vcmask 523264  }
   0xd   : > { %2099 = vmatpush3.msk.msra.mxu0 %vm463_vm0, %v446_v0  ;;  %2180 = vset.pattern.permute.xlu1 %v2269_v1  ;;  %s409_s21 = scalar_lea.vmem %s2923_s1, %s2336_s18  ;;  %s415_s24 = scalar_lea.vmem %s2924_s2, %s2336_s18  ;;  %v1948_v29 = vld [vmem:[%s2928_s6] ss:$0 sm:$0xff]  ;;  %v2376_v53 = vand.u32 127, %v618_v52 }
   0xe   : > { %v434_v2 = vld [vmem:[%s409_s21] sm:$0xff]  ;;  %v435_v3 = vld [vmem:[%s409_s21 + $0x8] sm:$0xff]  ;;  %v436_v4 = vld [vmem:[%s409_s21 + $0x10] sm:$0xff]  ;;  %s421_s27 = scalar_lea.vmem %s2925_s3, %s2336_s18  ;;  %s427_s11 = scalar_lea.vmem %s2932_s10, %s2336_s18 }
   0xf   : > { %2100 = vmatprep.mubr.msk.f32.mxu0 %vm450_vm1, %v434_v2  ;;  %v438_v5 = vld [vmem:[%s415_s24] sm:$0xff]  ;;  %v440_v6 = vld [vmem:[%s415_s24 + $0x10] sm:$0xff]  ;;  %v437_v7 = vld [vmem:[%s409_s21 + $0x18] sm:$0xff] }
  0x10   : > { %2101 = vmatmul.mubr.msk.f32.vlgmr.msra.gmra.mxu0 %vm450_vm1, %v435_v3  ;;  %554 = vperm.xlu0 %2179, %v438_v5   ;;  %v439_v8 = vld [vmem:[%s415_s24 + $0x8] sm:$0xff]  ;;  %v441_v9 = vld [vmem:[%s415_s24 + $0x18] sm:$0xff]  ;;  %v442_v10 = vld [vmem:[%s421_s27] sm:$0xff]  ;;  %s403_s24 = scalar_lea.vmem %s2922_s0, %s2336_s18 }
  0x11   : > { %2103 = vmatprep.mubr.msk.f32.mxu0 %vm450_vm1, %v436_v4  ;;  %564 = vperm.xlu1 %2180, %v440_v6   ;;  %v443_v11 = vld [vmem:[%s421_s27 + $0x8] sm:$0xff]  ;;  %v444_v12 = vld [vmem:[%s421_s27 + $0x10] sm:$0xff]  ;;  %v445_v13 = vld [vmem:[%s421_s27 + $0x18] sm:$0xff] }
  0x14   : > { %2104 = vmatmul.mubr.msk.f32.gmra.mxu0 %vm450_vm1, %v437_v7  ;;  %559 = vperm.xlu0 %2179, %v439_v8  }
  0x15   : > { %569 = vperm.xlu1 %2180, %v441_v9  }
  0x18   : > { %595 = vperm.xlu0 %2179, %v442_v10  }
  0x19   : > { %598 = vperm.xlu1 %2180, %v443_v11  }
  0x1c   : > { %601 = vperm.xlu0 %2179, %v444_v12  }
  0x1d   : > { %604 = vperm.xlu1 %2180, %v445_v13  }
  0x8b   : > { %v555_v14 = vpop.permute.xlu0 %554 }
  0x8c   : > { %v565_v15 = vpop.permute.xlu1 %564  ;;  %v578_v23 = vadd.f32 %v1947_v16, %v555_v14 }
  0x8d   : > { %v580_v34 = vadd.f32 %v1947_v16, %v565_v15 }
  0x8f   : > { %v560_v17 = vpop.permute.xlu0 %559 }
  0x90   : > { %v579_v18 = vadd.f32 %v1947_v16, %v560_v17  ;;  %v570_v19 = vpop.permute.xlu1 %569 }
  0x91   : > { %v581_v24 = vadd.f32 %v1947_v16, %v570_v19 }
  0x93   : > { %v596_v25 = vpop.permute.xlu0 %595 }
  0x94   : > { %v599_v30 = vpop.permute.xlu1 %598  ;;  %vm610_vm4 = vcmp.ne.s32.totalorder %v596_v25, %v1948_v29 }
  0x95   : > { %vm611_vm3 = vcmp.ne.s32.totalorder %v599_v30, %v1948_v29 }
  0x97   : > { %v602_v41 = vpop.permute.xlu0 %601 }
  0x98   : > { %v605_v45 = vpop.permute.xlu1 %604  ;;  %vm612_vm5 = vcmp.ne.s32.totalorder %v602_v41, %v1948_v29 }
  0x99   : > { %vm613_vm6 = vcmp.ne.s32.totalorder %v605_v45, %v1948_v29 }
  0xd0   : > { %v2102_v20 = vpop.f32.mrf.mxu0 }
  0xd1   : > { %v583_v21 = vmul.f32 2.0, %v2102_v20 }
  0xd2   : > { %v533_v22 = vpop.f32.mrf.mxu0 }
  0xd3   : > { %v587_v26 = vsub.f32 %v579_v18, %v583_v21  ;;  %v582_v27 = vmul.f32 2.0, %v533_v22 }
  0xd4   : > { %v2105_v28 = vpop.f32.mrf.mxu0 }
  0xd5   : > { %v591_v31 = vmax.f32 %v587_v26, 0.0  ;;  %v586_v32 = vsub.f32 %v578_v23, %v582_v27  ;;  %v585_v33 = vmul.f32 2.0, %v2105_v28 }
  0xd6   : > { %v543_v35 = vpop.f32.mrf.mxu0 }
  0xd7   : > { %v590_v36 = vmax.f32 %v586_v32, 0.0  ;;  %v589_v37 = vsub.f32 %v581_v24, %v585_v33  ;;  %v584_v38 = vmul.f32 2.0, %v543_v35  ;;  %v615_v39 = vsel %vm611_vm3, 1e+30, %v591_v31 }
  0xd8   : > { %v2361_v40 = vsel %vm620_vm2, %v615_v39, inf }
  0xd9   : > { %v588_v42 = vsub.f32 %v580_v34, %v584_v38  ;;  %625 = vmin.index.xlane.f32.xlu1 %v2361_v40  ;;  %v614_v43 = vsel %vm610_vm4, 1e+30, %v590_v36  ;;  %v593_v46 = vmax.f32 %v589_v37, 0.0 }
  0xda   : > { %v2365_v44 = vsel %vm620_vm2, %v614_v43, inf }
  0xdb   : > { %v592_v47 = vmax.f32 %v588_v42, 0.0  ;;  %622 = vmin.index.xlane.f32.xlu0 %v2365_v44  ;;  %v617_v50 = vsel %vm613_vm6, 1e+30, %v593_v46 }
  0xdc   : > { %v2373_v51 = vsel %vm620_vm2, %v617_v50, inf }
  0xdd   : > { %v616_v48 = vsel %vm612_vm5, 1e+30, %v592_v47 }
  0xde   : > { %v2369_v49 = vsel %vm620_vm2, %v616_v48, inf }
  0xdf   : > { %628 = vmin.index.xlane.f32.xlu0 %v2369_v49 }
  0xe3   : > { %631 = vmin.index.xlane.f32.xlu0 %v2373_v51 }
 0x162   : > { %v2378_v54 = vpop.xlane.xlu1 %625 }
 0x163   : > { %vm2938_vm7 = vcmp.eq.s32.totalorder %v2376_v53, %v2378_v54 }
 0x164   : > { %v2382_v55 = vpop.xlane.xlu0 %622  ;;  %v683_v56 = vsel %vm2938_vm7, 1e+30, %v615_v39 }
 0x165   : > { %vm641_vm8 = vcmp.eq.s32.totalorder %v2376_v53, %v2382_v55  ;;  %v2390_v57 = vsel %vm620_vm2, %v683_v56, inf }
 0x166   : > { %690 = vmin.index.xlane.f32.xlu0 %v2390_v57  ;;  %v682_v58 = vsel %vm641_vm8, 1e+30, %v614_v43 }
 0x167   : > { %v2397_v59 = vsel %vm620_vm2, %v682_v58, inf }
 0x168   : > { %687 = vmin.index.xlane.f32.xlu1 %v2397_v59  ;;  %v2400_v60 = vpop.xlane.xlu0 %628 }
 0x169   : > { %vm2939_vm9 = vcmp.eq.s32.totalorder %v2376_v53, %v2400_v60 }
 0x16a   : > { %v684_v61 = vsel %vm2939_vm9, 1e+30, %v616_v48 }
 0x16b   : > { %v2408_v62 = vsel %vm620_vm2, %v684_v61, inf }
 0x16c   : > { %693 = vmin.index.xlane.f32.xlu1 %v2408_v62  ;;  %v2411_v63 = vpop.xlane.xlu0 %631 }
 0x16d   : > { %vm2937_vm10 = vcmp.eq.s32.totalorder %v2376_v53, %v2411_v63 }
 0x16e   : > { %v685_v0 = vsel %vm2937_vm10, 1e+30, %v617_v50 }
 0x16f   : > { %v2419_v1 = vsel %vm620_vm2, %v685_v0, inf }
 0x170   : > { %696 = vmin.index.xlane.f32.xlu0 %v2419_v1 }
 0x1ef   : > { %v2422_v2 = vpop.xlane.xlu0 %690 }
 0x1f0   : > { %vm2934_vm11 = vcmp.eq.s32.totalorder %v2376_v53, %v2422_v2 }
 0x1f1   : > { %v2426_v3 = vpop.xlane.xlu1 %687  ;;  %v747_v4 = vsel %vm2934_vm11, 1e+30, %v683_v56 }
 0x1f2   : > { %vm2936_vm12 = vcmp.eq.s32.totalorder %v2376_v53, %v2426_v3  ;;  %v2434_v5 = vsel %vm620_vm2, %v747_v4, inf }
 0x1f3   : > { %754 = vmin.index.xlane.f32.xlu0 %v2434_v5  ;;  %v746_v6 = vsel %vm2936_vm12, 1e+30, %v682_v58 }
 0x1f4   : > { %v2441_v7 = vsel %vm620_vm2, %v746_v6, inf }
 0x1f5   : > { %751 = vmin.index.xlane.f32.xlu1 %v2441_v7  ;;  %v2444_v8 = vpop.xlane.xlu1 %693 }
 0x1f6   : > { %vm2935_vm13 = vcmp.eq.s32.totalorder %v2376_v53, %v2444_v8 }
 0x1f7   : > { %v748_v9 = vsel %vm2935_vm13, 1e+30, %v684_v61 }
 0x1f8   : > { %v2452_v10 = vsel %vm620_vm2, %v748_v9, inf }
 0x1f9   : > { %757 = vmin.index.xlane.f32.xlu1 %v2452_v10  ;;  %v2455_v11 = vpop.xlane.xlu0 %696 }
 0x1fa   : > { %vm2933_vm14 = vcmp.eq.s32.totalorder %v2376_v53, %v2455_v11 }
 0x1fb   : > { %v749_v12 = vsel %vm2933_vm14, 1e+30, %v685_v0 }
 0x1fc   : > { %v2463_v13 = vsel %vm620_vm2, %v749_v12, inf }
 0x1fd   : > { %760 = vmin.index.xlane.f32.xlu0 %v2463_v13 }
 0x27c   : > { %v2466_v14 = vpop.xlane.xlu0 %754 }
 0x27d   : > { %vm771_vm15 = vcmp.eq.s32.totalorder %v2376_v53, %v2466_v14 }
 0x27e   : > { %v2470_v15 = vpop.xlane.xlu1 %751  ;;  %v811_v16 = vsel %vm771_vm15, 1e+30, %v747_v4 }
 0x27f   : > { %vm770_vm0 = vcmp.eq.s32.totalorder %v2376_v53, %v2470_v15  ;;  %v2478_v17 = vsel %vm620_vm2, %v811_v16, inf }
 0x280   : > { %818 = vmin.index.xlane.f32.xlu0 %v2478_v17  ;;  %v810_v18 = vsel %vm770_vm0, 1e+30, %v746_v6 }
 0x281   : > { %v2485_v19 = vsel %vm620_vm2, %v810_v18, inf }
 0x282   : > { %815 = vmin.index.xlane.f32.xlu1 %v2485_v19  ;;  %v2488_v20 = vpop.xlane.xlu1 %757 }
 0x283   : > { %vm772_vm1 = vcmp.eq.s32.totalorder %v2376_v53, %v2488_v20 }
 0x284   : > { %v812_v21 = vsel %vm772_vm1, 1e+30, %v748_v9 }
 0x285   : > { %v2496_v22 = vsel %vm620_vm2, %v812_v21, inf }
 0x286   : > { %821 = vmin.index.xlane.f32.xlu1 %v2496_v22  ;;  %v2499_v23 = vpop.xlane.xlu0 %760 }
 0x287   : > { %vm773_vm3 = vcmp.eq.s32.totalorder %v2376_v53, %v2499_v23 }
 0x288   : > { %v813_v24 = vsel %vm773_vm3, 1e+30, %v749_v12 }
 0x289   : > { %v2507_v25 = vsel %vm620_vm2, %v813_v24, inf }
 0x28a   : > { %824 = vmin.index.xlane.f32.xlu0 %v2507_v25 }
 0x309   : > { %v2510_v26 = vpop.xlane.xlu0 %818 }
 0x30a   : > { %vm835_vm4 = vcmp.eq.s32.totalorder %v2376_v53, %v2510_v26 }
 0x30b   : > { %v2514_v27 = vpop.xlane.xlu1 %815  ;;  %v875_v28 = vsel %vm835_vm4, 1e+30, %v811_v16 }
 0x30c   : > { %vm834_vm5 = vcmp.eq.s32.totalorder %v2376_v53, %v2514_v27  ;;  %v2522_v29 = vsel %vm620_vm2, %v875_v28, inf }
 0x30d   : > { %882 = vmin.index.xlane.f32.xlu0 %v2522_v29  ;;  %v874_v30 = vsel %vm834_vm5, 1e+30, %v810_v18 }
 0x30e   : > { %v878_v31 = vsel %vm620_vm2, %v874_v30, inf }
 0x30f   : > { %879 = vmin.index.xlane.f32.xlu1 %v878_v31  ;;  %v2529_v32 = vpop.xlane.xlu1 %821 }
 0x310   : > { %vm836_vm6 = vcmp.eq.s32.totalorder %v2376_v53, %v2529_v32 }
 0x311   : > { %v876_v33 = vsel %vm836_vm6, 1e+30, %v812_v21 }
 0x312   : > { %v884_v34 = vsel %vm620_vm2, %v876_v33, inf }
 0x313   : > { %885 = vmin.index.xlane.f32.xlu1 %v884_v34  ;;  %v2537_v35 = vpop.xlane.xlu0 %824 }
 0x314   : > { %vm837_vm14 = vcmp.eq.s32.totalorder %v2376_v53, %v2537_v35 }
 0x315   : > { %v877_v36 = vsel %vm837_vm14, 1e+30, %v813_v24 }
 0x316   : > { %v887_v37 = vsel %vm620_vm2, %v877_v36, inf }
 0x317   : > { %888 = vmin.index.xlane.f32.xlu0 %v887_v37 }
 0x396   : > { %v2545_v38 = vpop.xlane.xlu0 %882 }
 0x397   : > { %vm899_vm11 = vcmp.eq.s32.totalorder %v2376_v53, %v2545_v38 }
 0x398   : > { %v2549_v39 = vpop.xlane.xlu1 %879  ;;  %v939_v41 = vsel %vm899_vm11, 1e+30, %v875_v28 }
 0x399   : > { %vm898_vm13 = vcmp.eq.s32.totalorder %v2376_v53, %v2549_v39  ;;  %v945_v42 = vsel %vm620_vm2, %v939_v41, inf }
 0x39a   : > { %946 = vmin.index.xlane.f32.xlu0 %v945_v42  ;;  %v938_v43 = vsel %vm898_vm13, 1e+30, %v874_v30 }
 0x39b   : > { %v942_v45 = vsel %vm620_vm2, %v938_v43, inf }
 0x39c   : > { %943 = vmin.index.xlane.f32.xlu1 %v942_v45  ;;  %v2561_v46 = vpop.xlane.xlu1 %885 }
 0x39d   : > { %vm900_vm12 = vcmp.eq.s32.totalorder %v2376_v53, %v2561_v46 }
 0x39e   : > { %v940_v47 = vsel %vm900_vm12, 1e+30, %v876_v33 }
 0x39f   : > { %v948_v48 = vsel %vm620_vm2, %v940_v47, inf }
 0x3a0   : > { %949 = vmin.index.xlane.f32.xlu1 %v948_v48  ;;  %v2569_v50 = vpop.xlane.xlu0 %888 }
 0x3a1   : > { %vm2940_vm10 = vcmp.eq.s32.totalorder %v2376_v53, %v2569_v50 }
 0x3a2   : > { %v941_v52 = vsel %vm2940_vm10, 1e+30, %v877_v36 }
 0x3a3   : > { %v951_v56 = vsel %vm620_vm2, %v941_v52, inf }
 0x3a4   : > { %952 = vmin.index.xlane.f32.xlu0 %v951_v56 }
 0x423   : > { %v2577_v58 = vpop.xlane.xlu0 %946 }
 0x424   : > { %vm2941_vm7 = vcmp.eq.s32.totalorder %v2376_v53, %v2577_v58 }
 0x425   : > { %v2581_v61 = vpop.xlane.xlu1 %943  ;;  %v1003_v0 = vsel %vm2941_vm7, 1e+30, %v939_v41 }
 0x426   : > { %vm2944_vm9 = vcmp.eq.s32.totalorder %v2376_v53, %v2581_v61  ;;  %v1009_v4 = vsel %vm620_vm2, %v1003_v0, inf }
 0x427   : > { %1010 = vmin.index.xlane.f32.xlu0 %v1009_v4  ;;  %v1002_v6 = vsel %vm2944_vm9, 1e+30, %v938_v43 }
 0x428   : > { %v1006_v9 = vsel %vm620_vm2, %v1002_v6, inf }
 0x429   : > { %1007 = vmin.index.xlane.f32.xlu1 %v1006_v9  ;;  %v2593_v12 = vpop.xlane.xlu1 %949 }
 0x42a   : > { %vm2943_vm10 = vcmp.eq.s32.totalorder %v2376_v53, %v2593_v12 }
 0x42b   : > { %v1004_v16 = vsel %vm2943_vm10, 1e+30, %v940_v47 }
 0x42c   : > { %v1012_v18 = vsel %vm620_vm2, %v1004_v16, inf }
 0x42d   : > { %1013 = vmin.index.xlane.f32.xlu1 %v1012_v18  ;;  %v2601_v21 = vpop.xlane.xlu0 %952 }
 0x42e   : > { %vm2942_vm7 = vcmp.eq.s32.totalorder %v2376_v53, %v2601_v21 }
 0x42f   : > { %v1005_v24 = vsel %vm2942_vm7, 1e+30, %v941_v52 }
 0x430   : > { %v1015_v28 = vsel %vm620_vm2, %v1005_v24, inf }
 0x431   : > { %762 = vmin.xlane.f32.xlu1 %v2441_v7  ;;  %1016 = vmin.index.xlane.f32.xlu0 %v1015_v28 }
 0x435   : > { %766 = vmin.xlane.f32.xlu1 %v2452_v10  ;;  %764 = vmin.xlane.f32.xlu0 %v2434_v5  ;;  %v449_v5 = vld [vmem:[%s2929_s7] sm:$0xf] }
 0x436   : > { %2169 = vmatprep.subr.msk.bf16.mxu1 %vm620_vm2, %v449_v5  ;;  %2168 = vmatprep.subr.msk.bf16.mxu0 %vm620_vm2, %v449_v5 }
 0x439   : > { %826 = vmin.xlane.f32.xlu1 %v2485_v19  ;;  %768 = vmin.xlane.f32.xlu0 %v2463_v13 }
 0x43d   : > { %830 = vmin.xlane.f32.xlu1 %v2496_v22  ;;  %828 = vmin.xlane.f32.xlu0 %v2478_v17 }
 0x441   : > { %890 = vmin.xlane.f32.xlu1 %v878_v31  ;;  %832 = vmin.xlane.f32.xlu0 %v2507_v25 }
 0x445   : > { %894 = vmin.xlane.f32.xlu1 %v884_v34  ;;  %892 = vmin.xlane.f32.xlu0 %v2522_v29 }
 0x449   : > { %633 = vmin.xlane.f32.xlu1 %v2365_v44  ;;  %896 = vmin.xlane.f32.xlu0 %v887_v37  ;;  %v1291_v44 = vsel %vm620_vm2, %v449_v5, 0 }
 0x44a   : > { %2167 = vmatpush3.bf16.xpose.msra.mxu1 %v1291_v44  ;;  %2107 = vmatpush3.bf16.xpose.msra.mxu0 %v1291_v44 }
 0x44d   : > { %637 = vmin.xlane.f32.xlu1 %v2369_v49  ;;  %635 = vmin.xlane.f32.xlu0 %v2361_v40 }
 0x451   : > { %954 = vmin.xlane.f32.xlu1 %v942_v45  ;;  %639 = vmin.xlane.f32.xlu0 %v2373_v51 }
 0x455   : > { %958 = vmin.xlane.f32.xlu1 %v948_v48  ;;  %956 = vmin.xlane.f32.xlu0 %v945_v42 }
 0x459   : > { %698 = vmin.xlane.f32.xlu1 %v2397_v59  ;;  %960 = vmin.xlane.f32.xlu0 %v951_v56 }
 0x45d   : > { %702 = vmin.xlane.f32.xlu1 %v2408_v62  ;;  %700 = vmin.xlane.f32.xlu0 %v2390_v57 }
 0x461   : > { %1018 = vmin.xlane.f32.xlu1 %v1006_v9  ;;  %704 = vmin.xlane.f32.xlu0 %v2419_v1 }
 0x465   : > { %1022 = vmin.xlane.f32.xlu1 %v1012_v18  ;;  %1020 = vmin.xlane.f32.xlu0 %v1009_v4 }
 0x469   : > { %1024 = vmin.xlane.f32.xlu0 %v1015_v28 }
 0x4b0   : > { %v2632_v40 = vpop.xlane.xlu0 %1010 }
 0x4b1   : > { %vm2945_vm7 = vcmp.eq.s32.totalorder %v2376_v53, %v2632_v40 }
 0x4b2   : > { %v2636_v49 = vpop.xlane.xlu1 %1007  ;;  %v1067_v51 = vsel %vm2945_vm7, 1e+30, %v1003_v0 }
 0x4b3   : > { %vm1026_vm10 = vcmp.eq.s32.totalorder %v2376_v53, %v2636_v49  ;;  %v1073_v57 = vsel %vm620_vm2, %v1067_v51, inf }
 0x4b4   : > { %1084 = vmin.xlane.f32.xlu0 %v1073_v57  ;;  %v1066_v59 = vsel %vm1026_vm10, 1e+30, %v1002_v6 }
 0x4b5   : > { %v1070_v62 = vsel %vm620_vm2, %v1066_v59, inf }
 0x4b6   : > { %1082 = vmin.xlane.f32.xlu1 %v1070_v62  ;;  %v2648_v1 = vpop.xlane.xlu1 %1013 }
 0x4b7   : > { %vm1028_vm9 = vcmp.eq.s32.totalorder %v2376_v53, %v2648_v1 }
 0x4b8   : > { %v1068_v7 = vsel %vm1028_vm9, 1e+30, %v1004_v16 }
 0x4b9   : > { %v1076_v10 = vsel %vm620_vm2, %v1068_v7, inf }
 0x4ba   : > { %1086 = vmin.xlane.f32.xlu1 %v1076_v10  ;;  %v763_v13 = vpop.xlane.xlu1 %762  ;;  %v2656_v17 = vpop.xlane.xlu0 %1016 }
 0x4bb   : > { %v774_v19 = vmul.f32 -10.0, %v763_v13  ;;  %vm2946_vm7 = vcmp.eq.s32.totalorder %v2376_v53, %v2656_v17 }
 0x4bc   : > { %v1069_v22 = vsel %vm2946_vm7, 1e+30, %v1005_v24  ;;  %vm677_vm7 = vcmask 519168  }
 0x4bd   : > { %v778_v25 = vmul.f32 1.442695, %v774_v19  ;;  %v1079_v29 = vsel %vm620_vm2, %v1069_v22, inf }
 0x4be   : > { %1071 = vmin.index.xlane.f32.xlu1 %v1070_v62  ;;  %v767_v30 = vpop.xlane.xlu1 %766  ;;  %1088 = vmin.xlane.f32.xlu0 %v1079_v29  ;;  %v765_v31 = vpop.xlane.xlu0 %764 }
 0x4bf   : > { %2197 = vpow2.f32 %v778_v25  ;;  %v776_v33 = vmul.f32 -10.0, %v767_v30  ;;  %v775_v34 = vmul.f32 -10.0, %v765_v31 }
 0x4c1   : > { %v782_v36 = vmul.f32 1.442695, %v776_v33  ;;  %v780_v37 = vmul.f32 1.442695, %v775_v34 }
 0x4c2   : > { %1077 = vmin.index.xlane.f32.xlu1 %v1076_v10  ;;  %v827_v41 = vpop.xlane.xlu1 %826  ;;  %1074 = vmin.index.xlane.f32.xlu0 %v1073_v57  ;;  %v769_v42 = vpop.xlane.xlu0 %768 }
 0x4c3   : > { %2199 = vpow2.f32 %v782_v36  ;;  %v838_v43 = vmul.f32 -10.0, %v827_v41  ;;  %v777_v45 = vmul.f32 -10.0, %v769_v42 }
 0x4c4   : > { %2201 = vpow2.f32 %v780_v37 }
 0x4c5   : > { %v842_v47 = vmul.f32 1.442695, %v838_v43  ;;  %v784_v48 = vmul.f32 1.442695, %v777_v45 }
 0x4c6   : > { %v831_v52 = vpop.xlane.xlu1 %830  ;;  %1080 = vmin.index.xlane.f32.xlu0 %v1079_v29  ;;  %v829_v56 = vpop.xlane.xlu0 %828 }
 0x4c7   : > { %2203 = vpow2.f32 %v842_v47  ;;  %v840_v0 = vmul.f32 -10.0, %v831_v52  ;;  %v839_v4 = vmul.f32 -10.0, %v829_v56 }
 0x4c8   : > { %2205 = vpow2.f32 %v784_v48 }
 0x4c9   : > { %v846_v6 = vmul.f32 1.442695, %v840_v0  ;;  %v844_v9 = vmul.f32 1.442695, %v839_v4 }
 0x4ca   : > { %v891_v16 = vpop.xlane.xlu1 %890  ;;  %v833_v18 = vpop.xlane.xlu0 %832 }
 0x4cb   : > { %2207 = vpow2.f32 %v846_v6  ;;  %v902_v24 = vmul.f32 -10.0, %v891_v16  ;;  %v841_v28 = vmul.f32 -10.0, %v833_v18 }
 0x4cc   : > { %v2198_v5 = vpop.eup %2197  ;;  %2209 = vpow2.f32 %v844_v9 }
 0x4cd   : > { %v786_v44 = vsel %vm770_vm0, %v2198_v5, 0.0  ;;  %v906_v51 = vmul.f32 1.442695, %v902_v24  ;;  %v848_v57 = vmul.f32 1.442695, %v841_v28  ;;  %vm2953_vm0 = vcmp.eq.s32.totalorder %v2376_v53, %v2577_v58 }
 0x4ce   : > { %v2036_v59 = vpack.c.bf16 %v786_v44, %v786_v44  ;;  %v895_v62 = vpop.xlane.xlu1 %894  ;;  %v893_v7 = vpop.xlane.xlu0 %892 }
 0x4cf   : > { %2211 = vpow2.f32 %v906_v51  ;;  %v904_v10 = vmul.f32 -10.0, %v895_v62  ;;  %v903_v13 = vmul.f32 -10.0, %v893_v7 }
 0x4d0   : > { %v2200_v19 = vpop.eup %2199  ;;  %806 = vst.msk [vmem:[#allocation2 + $0x20] sm:$0xf] %vm677_vm7, %v2036_v59  ;;  %2213 = vpow2.f32 %v848_v57 }
 0x4d1   : > { %v2202_v22 = vpop.eup %2201  ;;  %v788_v25 = vsel %vm772_vm1, %v2200_v19, 0.0  ;;  %v910_v29 = vmul.f32 1.442695, %v904_v10  ;;  %v908_v15 = vmul.f32 1.442695, %v903_v13  ;;  %vm2954_vm1 = vcmp.eq.s32.totalorder %v2376_v53, %v2426_v3 }
 0x4d2   : > { %v2038_v30 = vpack.c.bf16 %v788_v25, %v788_v25  ;;  %v787_v31 = vsel %vm771_vm15, %v2202_v22, 0.0  ;;  %v634_v33 = vpop.xlane.xlu1 %633  ;;  %v897_v34 = vpop.xlane.xlu0 %896  ;;  %vm2952_vm15 = vcmp.eq.s32.totalorder %v2376_v53, %v2593_v12 }
 0x4d3   : > { %v2037_v36 = vpack.c.bf16 %v787_v31, %v787_v31  ;;  %2215 = vpow2.f32 %v910_v29  ;;  %v645_v37 = vmul.f32 -10.0, %v634_v33  ;;  %v905_v41 = vmul.f32 -10.0, %v897_v34 }
 0x4d4   : > { %v2204_v42 = vpop.eup %2203  ;;  %808 = vst.msk [vmem:[#allocation2 + $0x28] sm:$0xf] %vm677_vm7, %v2038_v30  ;;  %2217 = vpow2.f32 %v908_v15 }
 0x4d5   : > { %v2206_v43 = vpop.eup %2205  ;;  %807 = vst.msk [vmem:[#allocation2 + $0x24] sm:$0xf] %vm677_vm7, %v2037_v36  ;;  %v850_v20 = vsel %vm834_vm5, %v2204_v42, 0.0  ;;  %v649_v45 = vmul.f32 1.442695, %v645_v37  ;;  %vm2957_vm5 = vcmp.eq.s32.totalorder %v2376_v53, %v2422_v2 }
 0x4d6   : > { %v912_v14 = vmul.f32 1.442695, %v905_v41  ;;  %v2040_v47 = vpack.c.bf16 %v850_v20, %v850_v20  ;;  %v789_v48 = vsel %vm773_vm3, %v2206_v43, 0.0  ;;  %v638_v52 = vpop.xlane.xlu1 %637  ;;  %v636_v56 = vpop.xlane.xlu0 %635  ;;  %vm2955_vm3 = vcmp.eq.s32.totalorder %v2376_v53, %v2601_v21 }
 0x4d7   : > { %v2039_v0 = vpack.c.bf16 %v789_v48, %v789_v48  ;;  %2219 = vpow2.f32 %v649_v45  ;;  %v647_v4 = vmul.f32 -10.0, %v638_v52  ;;  %v646_v6 = vmul.f32 -10.0, %v636_v56 }
 0x4d8   : > { %v2208_v9 = vpop.eup %2207  ;;  %870 = vst.msk [vmem:[#allocation2 + $0x30] sm:$0xf] %vm677_vm7, %v2040_v47  ;;  %2221 = vpow2.f32 %v912_v14 }
 0x4d9   : > { %v2210_v16 = vpop.eup %2209  ;;  %809 = vst.msk [vmem:[#allocation2 + $0x2c] sm:$0xf] %vm677_vm7, %v2039_v0  ;;  %v852_v27 = vsel %vm836_vm6, %v2208_v9, 0.0  ;;  %v653_v18 = vmul.f32 1.442695, %v647_v4  ;;  %vm2958_vm6 = vcmp.eq.s32.totalorder %v2376_v53, %v2455_v11 }
 0x4da   : > { %v651_v23 = vmul.f32 1.442695, %v646_v6  ;;  %v2042_v24 = vpack.c.bf16 %v852_v27, %v852_v27  ;;  %v851_v28 = vsel %vm835_vm4, %v2210_v16, 0.0  ;;  %v955_v5 = vpop.xlane.xlu1 %954  ;;  %v640_v44 = vpop.xlane.xlu0 %639  ;;  %vm2956_vm4 = vcmp.eq.s32.totalorder %v2376_v53, %v2444_v8 }
 0x4db   : > { %v2041_v51 = vpack.c.bf16 %v851_v28, %v851_v28  ;;  %2223 = vpow2.f32 %v653_v18  ;;  %v966_v57 = vmul.f32 -10.0, %v955_v5  ;;  %v648_v59 = vmul.f32 -10.0, %v640_v44 }
 0x4dc   : > { %v2212_v62 = vpop.eup %2211  ;;  %872 = vst.msk [vmem:[#allocation2 + $0x38] sm:$0xf] %vm677_vm7, %v2042_v24  ;;  %2225 = vpow2.f32 %v651_v23  ;;  %v2181_v7 = vld [vmem:[#allocation2 + $0x20] sm:$0xff]  }
 0x4dd   : > { %v2214_v32 = vpop.eup %2213  ;;  %871 = vst.msk [vmem:[#allocation2 + $0x34] sm:$0xf] %vm677_vm7, %v2041_v51  ;;  %v914_v10 = vsel %vm898_vm13, %v2212_v62, 0.0  ;;  %v970_v26 = vmul.f32 1.442695, %v966_v57  ;;  %2116 = vmatprep.mubr.msk.bf16.mxu1 %vm620_vm2, %v2181_v7  ;;  %vm2950_vm13 = vcmp.eq.s32.totalorder %v2376_v53, %v2581_v61 }
 0x4de   : > { %v655_v13 = vmul.f32 1.442695, %v648_v59  ;;  %v2044_v19 = vpack.c.bf16 %v914_v10, %v914_v10  ;;  %v853_v22 = vsel %vm837_vm14, %v2214_v32, 0.0  ;;  %v959_v25 = vpop.xlane.xlu1 %958  ;;  %v957_v29 = vpop.xlane.xlu0 %956  ;;  %vm2951_vm14 = vcmp.eq.s32.totalorder %v2376_v53, %v2411_v63 }
 0x4df   : > { %v2043_v15 = vpack.c.bf16 %v853_v22, %v853_v22  ;;  %2227 = vpow2.f32 %v970_v26  ;;  %v968_v30 = vmul.f32 -10.0, %v959_v25  ;;  %v967_v31 = vmul.f32 -10.0, %v957_v29 }
 0x4e0   : > { %v2216_v33 = vpop.eup %2215  ;;  %934 = vst.msk [vmem:[#allocation2 + $0x40] sm:$0xf] %vm677_vm7, %v2044_v19  ;;  %2229 = vpow2.f32 %v655_v13  ;;  %v2182_v39 = vld [vmem:[#allocation2 + $0x28] sm:$0xff]  }
 0x4e1   : > { %v2218_v34 = vpop.eup %2217  ;;  %873 = vst.msk [vmem:[#allocation2 + $0x3c] sm:$0xf] %vm677_vm7, %v2043_v15  ;;  %v916_v35 = vsel %vm900_vm12, %v2216_v33, 0.0  ;;  %v974_v36 = vmul.f32 1.442695, %v968_v30  ;;  %2117 = vmatmul.mubr.msk.bf16.vlgmr.msra.gmra.mxu1 %vm620_vm2, %v2182_v39  ;;  %vm2949_vm12 = vcmp.eq.s32.totalorder %v2376_v53, %v2378_v54 }
 0x4e2   : > { %v972_v37 = vmul.f32 1.442695, %v967_v31  ;;  %v2046_v41 = vpack.c.bf16 %v916_v35, %v916_v35  ;;  %v915_v42 = vsel %vm899_vm11, %v2218_v34, 0.0  ;;  %v699_v43 = vpop.xlane.xlu1 %698  ;;  %v961_v20 = vpop.xlane.xlu0 %960  ;;  %vm2947_vm11 = vcmp.eq.s32.totalorder %v2376_v53, %v2569_v50 }
 0x4e3   : > { %v2045_v45 = vpack.c.bf16 %v915_v42, %v915_v42  ;;  %2231 = vpow2.f32 %v974_v36  ;;  %v710_v14 = vmul.f32 -10.0, %v699_v43  ;;  %v969_v47 = vmul.f32 -10.0, %v961_v20 }
 0x4e4   : > { %v2220_v48 = vpop.eup %2219  ;;  %936 = vst.msk [vmem:[#allocation2 + $0x48] sm:$0xf] %vm677_vm7, %v2046_v41  ;;  %2233 = vpow2.f32 %v972_v37  ;;  %v2183_v46 = vld [vmem:[#allocation2 + $0x30] sm:$0xff]  }
 0x4e5   : > { %v2222_v52 = vpop.eup %2221  ;;  %935 = vst.msk [vmem:[#allocation2 + $0x44] sm:$0xf] %vm677_vm7, %v2045_v45  ;;  %v657_v38 = vsel %vm641_vm8, %v2220_v48, 0.0  ;;  %v714_v56 = vmul.f32 1.442695, %v710_v14  ;;  %2120 = vmatprep.mubr.msk.bf16.mxu1 %vm620_vm2, %v2183_v46  ;;  %vm2948_vm8 = vcmp.eq.s32.totalorder %v2376_v53, %v2400_v60 }
 0x4e6   : > { %v976_v0 = vmul.f32 1.442695, %v969_v47  ;;  %v2028_v4 = vpack.c.bf16 %v657_v38, %v657_v38  ;;  %v917_v6 = vsel %vm2947_vm11, %v2222_v52, 0.0  ;;  %v703_v9 = vpop.xlane.xlu1 %702  ;;  %v701_v16 = vpop.xlane.xlu0 %700  ;;  %vm2960_vm11 = vcmp.eq.s32.totalorder %v2376_v53, %v2656_v17 }
 0x4e7   : > { %v2047_v27 = vpack.c.bf16 %v917_v6, %v917_v6  ;;  %2235 = vpow2.f32 %v714_v56  ;;  %v712_v18 = vmul.f32 -10.0, %v703_v9  ;;  %v711_v23 = vmul.f32 -10.0, %v701_v16 }
 0x4e8   : > { %v2224_v24 = vpop.eup %2223  ;;  %678 = vst.msk [vmem:[#allocation2] sm:$0xf] %vm677_vm7, %v2028_v4  ;;  %2237 = vpow2.f32 %v976_v0  ;;  %v2184_v55 = vld [vmem:[#allocation2 + $0x38] sm:$0xff]  }
 0x4e9   : > { %v2226_v28 = vpop.eup %2225  ;;  %937 = vst.msk [vmem:[#allocation2 + $0x4c] sm:$0xf] %vm677_vm7, %v2047_v27  ;;  %v659_v50 = vsel %vm2948_vm8, %v2224_v24, 0.0  ;;  %v718_v5 = vmul.f32 1.442695, %v712_v18  ;;  %2121 = vmatmul.mubr.msk.bf16.gmra.mxu1 %vm620_vm2, %v2184_v55 }
 0x4ea   : > { %v716_v44 = vmul.f32 1.442695, %v711_v23  ;;  %v2030_v51 = vpack.c.bf16 %v659_v50, %v659_v50  ;;  %v658_v57 = vsel %vm2949_vm12, %v2226_v28, 0.0  ;;  %v1019_v59 = vpop.xlane.xlu1 %1018  ;;  %v705_v62 = vpop.xlane.xlu0 %704 }
 0x4eb   : > { %v2029_v7 = vpack.c.bf16 %v658_v57, %v658_v57  ;;  %2239 = vpow2.f32 %v718_v5  ;;  %v1030_v32 = vmul.f32 -10.0, %v1019_v59  ;;  %v713_v10 = vmul.f32 -10.0, %v705_v62 }
 0x4ec   : > { %v2228_v26 = vpop.eup %2227  ;;  %680 = vst.msk [vmem:[#allocation2 + $0x8] sm:$0xf] %vm677_vm7, %v2030_v51  ;;  %2241 = vpow2.f32 %v716_v44  ;;  %v2185_v60 = vld [vmem:[#allocation2 + $0x40] sm:$0xff]  }
 0x4ed   : > { %v2230_v13 = vpop.eup %2229  ;;  %679 = vst.msk [vmem:[#allocation2 + $0x4] sm:$0xf] %vm677_vm7, %v2029_v7  ;;  %v978_v54 = vsel %vm2950_vm13, %v2228_v26, 0.0  ;;  %v1034_v19 = vmul.f32 1.442695, %v1030_v32  ;;  %2124 = vmatprep.mubr.msk.bf16.mxu1 %vm620_vm2, %v2185_v60 }
 0x4ee   : > { %v720_v22 = vmul.f32 1.442695, %v713_v10  ;;  %v2048_v25 = vpack.c.bf16 %v978_v54, %v978_v54  ;;  %v660_v29 = vsel %vm2951_vm14, %v2230_v13, 0.0  ;;  %v1023_v15 = vpop.xlane.xlu1 %1022  ;;  %v1021_v30 = vpop.xlane.xlu0 %1020  ;;  %vm1830_vm14 = vcmask 261120  }
 0x4ef   : > { %v2031_v31 = vpack.c.bf16 %v660_v29, %v660_v29  ;;  %2243 = vpow2.f32 %v1034_v19  ;;  %v1032_v33 = vmul.f32 -10.0, %v1023_v15  ;;  %v1031_v39 = vmul.f32 -10.0, %v1021_v30 }
 0x4f0   : > { %v2232_v34 = vpop.eup %2231  ;;  %998 = vst.msk [vmem:[#allocation2 + $0x50] sm:$0xf] %vm677_vm7, %v2048_v25  ;;  %2245 = vpow2.f32 %v720_v22  ;;  %v2186_v61 = vld [vmem:[#allocation2 + $0x48] sm:$0xff]  }
 0x4f1   : > { %v2234_v35 = vpop.eup %2233  ;;  %681 = vst.msk [vmem:[#allocation2 + $0xc] sm:$0xf] %vm677_vm7, %v2031_v31  ;;  %v980_v63 = vsel %vm2952_vm15, %v2232_v34, 0.0  ;;  %v1038_v36 = vmul.f32 1.442695, %v1032_v33  ;;  %2125 = vmatmul.mubr.msk.bf16.gmra.mxu1 %vm620_vm2, %v2186_v61 }
 0x4f2   : > { %v1036_v37 = vmul.f32 1.442695, %v1031_v39  ;;  %v2050_v41 = vpack.c.bf16 %v980_v63, %v980_v63  ;;  %v979_v42 = vsel %vm2953_vm0, %v2234_v35, 0.0  ;;  %v1025_v43 = vpop.xlane.xlu0 %1024 }
 0x4f3   : > { %v2049_v20 = vpack.c.bf16 %v979_v42, %v979_v42  ;;  %2247 = vpow2.f32 %v1038_v36  ;;  %v1033_v45 = vmul.f32 -10.0, %v1025_v43 }
 0x4f4   : > { %v2236_v14 = vpop.eup %2235  ;;  %1000 = vst.msk [vmem:[#allocation2 + $0x58] sm:$0xf] %vm677_vm7, %v2050_v41  ;;  %2249 = vpow2.f32 %v1036_v37  ;;  %v2187_v47 = vld [vmem:[#allocation2] sm:$0xff]  }
 0x4f5   : > { %v2238_v12 = vpop.eup %2237  ;;  %999 = vst.msk [vmem:[#allocation2 + $0x54] sm:$0xf] %vm677_vm7, %v2049_v20  ;;  %v722_v48 = vsel %vm2954_vm1, %v2236_v14, 0.0  ;;  %v1040_v58 = vmul.f32 1.442695, %v1033_v45  ;;  %2108 = vmatprep.mubr.msk.bf16.mxu0 %vm620_vm2, %v2187_v47  ;;  %v1516_v47 = vld [vmem:[%s2930_s8 + $0x10] sm:$0xff] }
 0x4f6   : > { %v2032_v46 = vpack.c.bf16 %v722_v48, %v722_v48  ;;  %v981_v52 = vsel %vm2955_vm3, %v2238_v12, 0.0  ;;  %2140 = vmatprep.subr.mxu0 %v1516_v47 }
 0x4f7   : > { %v2051_v38 = vpack.c.bf16 %v981_v52, %v981_v52  ;;  %2251 = vpow2.f32 %v1040_v58 }
 0x4f8   : > { %v2240_v56 = vpop.eup %2239  ;;  %742 = vst.msk [vmem:[#allocation2 + $0x10] sm:$0xf] %vm677_vm7, %v2032_v46  ;;  %v2188_v0 = vld [vmem:[#allocation2 + $0x8] sm:$0xff]  }
 0x4f9   : > { %v2242_v4 = vpop.eup %2241  ;;  %1001 = vst.msk [vmem:[#allocation2 + $0x5c] sm:$0xf] %vm677_vm7, %v2051_v38  ;;  %v724_v3 = vsel %vm2956_vm4, %v2240_v56, 0.0  ;;  %2109 = vmatmul.mubr.msk.bf16.vlgmr.msra.gmra.mxu0 %vm620_vm2, %v2188_v0 }
 0x4fa   : > { %v2034_v6 = vpack.c.bf16 %v724_v3, %v724_v3  ;;  %v723_v21 = vsel %vm2957_vm5, %v2242_v4, 0.0  ;;  %2141 = vmatpush3.msra.mxu0 %v1516_v47 }
 0x4fb   : > { %v2033_v9 = vpack.c.bf16 %v723_v21, %v723_v21 }
 0x4fc   : > { %v2244_v16 = vpop.eup %2243  ;;  %744 = vst.msk [vmem:[#allocation2 + $0x18] sm:$0xf] %vm677_vm7, %v2034_v6  ;;  %v2189_v27 = vld [vmem:[#allocation2 + $0x50] sm:$0xff]  }
 0x4fd   : > { %v2246_v18 = vpop.eup %2245  ;;  %743 = vst.msk [vmem:[#allocation2 + $0x14] sm:$0xf] %vm677_vm7, %v2033_v9  ;;  %v1042_v8 = vsel %vm1026_vm10, %v2244_v16, 0.0  ;;  %2128 = vmatprep.mubr.msk.bf16.mxu1 %vm620_vm2, %v2189_v27  ;;  %vm2959_vm10 = vcmp.eq.s32.totalorder %v2376_v53, %v2632_v40 }
 0x4fe   : > { %v2052_v23 = vpack.c.bf16 %v1042_v8, %v1042_v8  ;;  %v725_v2 = vsel %vm2958_vm6, %v2246_v18, 0.0 }
 0x4ff   : > { %v2035_v24 = vpack.c.bf16 %v725_v2, %v725_v2 }
 0x500   : > { %v2248_v55 = vpop.eup %2247  ;;  %1062 = vst.msk [vmem:[#allocation2 + $0x60] sm:$0xf] %vm677_vm7, %v2052_v23  ;;  %v2190_v28 = vld [vmem:[#allocation2 + $0x58] sm:$0xff]  }
 0x501   : > { %v2250_v50 = vpop.eup %2249  ;;  %745 = vst.msk [vmem:[#allocation2 + $0x1c] sm:$0xf] %vm677_vm7, %v2035_v24  ;;  %v1044_v49 = vsel %vm1028_vm9, %v2248_v55, 0.0  ;;  %2129 = vmatmul.mubr.msk.bf16.gmra.mxu1 %vm620_vm2, %v2190_v28 }
 0x502   : > { %v2054_v5 = vpack.c.bf16 %v1044_v49, %v1044_v49  ;;  %v1043_v11 = vsel %vm2959_vm10, %v2250_v50, 0.0 }
 0x503   : > { %v2053_v44 = vpack.c.bf16 %v1043_v11, %v1043_v11 }
 0x504   : > { %v2252_v51 = vpop.eup %2251  ;;  %1064 = vst.msk [vmem:[#allocation2 + $0x68] sm:$0xf] %vm677_vm7, %v2054_v5  ;;  %v2191_v57 = vld [vmem:[#allocation2 + $0x10] sm:$0xff]  }
 0x505   : > { %1063 = vst.msk [vmem:[#allocation2 + $0x64] sm:$0xf] %vm677_vm7, %v2053_v44  ;;  %v1045_v59 = vsel %vm2960_vm11, %v2252_v51, 0.0  ;;  %2112 = vmatprep.mubr.msk.bf16.mxu0 %vm620_vm2, %v2191_v57 }
 0x506   : > { %v2055_v1 = vpack.c.bf16 %v1045_v59, %v1045_v59 }
 0x508   : > { %1065 = vst.msk [vmem:[#allocation2 + $0x6c] sm:$0xf] %vm677_vm7, %v2055_v1  ;;  %v2192_v40 = vld [vmem:[#allocation2 + $0x18] sm:$0xff]  }
 0x509   : > { %2113 = vmatmul.mubr.msk.bf16.gmra.mxu0 %vm620_vm2, %v2192_v40 }
 0x50c   : > { %v2193_v62 = vld [vmem:[#allocation2 + $0x60] sm:$0xff]  }
 0x50d   : > { %2132 = vmatprep.mubr.msk.bf16.mxu1 %vm620_vm2, %v2193_v62 }
 0x50f   : > { %v2194_v7 = vld [vmem:[#allocation2 + $0x68] sm:$0xff]  }
 0x510   : > { %2133 = vmatmul.mubr.msk.bf16.gmra.mxu1 %vm620_vm2, %v2194_v7 }
 0x53d   : > { %v1085_v32 = vpop.xlane.xlu0 %1084 }
 0x53e   : > { %v1095_v10 = vmul.f32 -10.0, %v1085_v32 }
 0x53f   : > { %v1083_v26 = vpop.xlane.xlu1 %1082 }
 0x540   : > { %v1100_v60 = vmul.f32 1.442695, %v1095_v10  ;;  %v1094_v17 = vmul.f32 -10.0, %v1083_v26 }
 0x542   : > { %2253 = vpow2.f32 %v1100_v60  ;;  %v1098_v13 = vmul.f32 1.442695, %v1094_v17 }
 0x543   : > { %v1087_v54 = vpop.xlane.xlu1 %1086 }
 0x544   : > { %2255 = vpow2.f32 %v1098_v13  ;;  %v1096_v19 = vmul.f32 -10.0, %v1087_v54 }
 0x546   : > { %v1102_v22 = vmul.f32 1.442695, %v1096_v19 }
 0x547   : > { %v1089_v25 = vpop.xlane.xlu0 %1088  ;;  %v1072_v30 = vpop.xlane.xlu1 %1071 }
 0x548   : > { %2257 = vpow2.f32 %v1102_v22  ;;  %v1097_v29 = vmul.f32 -10.0, %v1089_v25  ;;  %vm1090_vm8 = vcmp.eq.s32.totalorder %v2376_v53, %v1072_v30 }
 0x54a   : > { %v1104_v15 = vmul.f32 1.442695, %v1097_v29 }
 0x54b   : > { %v1075_v31 = vpop.xlane.xlu0 %1074  ;;  %v1078_v63 = vpop.xlane.xlu1 %1077 }
 0x54c   : > { %2259 = vpow2.f32 %v1104_v15  ;;  %vm1091_vm9 = vcmp.eq.s32.totalorder %v2376_v53, %v1075_v31  ;;  %vm1092_vm12 = vcmp.eq.s32.totalorder %v2376_v53, %v1078_v63 }
 0x54f   : > { %v2254_v33 = vpop.eup %2253  ;;  %v1081_v42 = vpop.xlane.xlu0 %1080 }
 0x550   : > { %v1107_v39 = vsel %vm1091_vm9, %v2254_v33, 0.0  ;;  %vm1093_vm13 = vcmp.eq.s32.totalorder %v2376_v53, %v1081_v42  ;;  %v2806_v53 = vld [vmem:[%s2930_s8 + $0x8] sm:$0xff] }
 0x551   : > { %v2256_v34 = vpop.eup %2255  ;;  %v2057_v61 = vpack.c.bf16 %v1107_v39, %v1107_v39  ;;  %2148 = vmatprep.subr.mxu0 %v2806_v53 }
 0x552   : > { %v1106_v35 = vsel %vm1090_vm8, %v2256_v34, 0.0 }
 0x553   : > { %v2056_v36 = vpack.c.bf16 %v1106_v35, %v1106_v35  ;;  %1127 = vst.msk [vmem:[#allocation2 + $0x74] sm:$0xf] %vm677_vm7, %v2057_v61 }
 0x555   : > { %v2258_v37 = vpop.eup %2257  ;;  %1126 = vst.msk [vmem:[#allocation2 + $0x70] sm:$0xf] %vm677_vm7, %v2056_v36 }
 0x556   : > { %v1108_v41 = vsel %vm1092_vm12, %v2258_v37, 0.0 }
 0x557   : > { %v2058_v43 = vpack.c.bf16 %v1108_v41, %v1108_v41 }
 0x559   : > { %v2260_v20 = vpop.eup %2259  ;;  %1128 = vst.msk [vmem:[#allocation2 + $0x78] sm:$0xf] %vm677_vm7, %v2058_v43 }
 0x55a   : > { %v1109_v45 = vsel %vm1093_vm13, %v2260_v20, 0.0 }
 0x55b   : > { %v2059_v14 = vpack.c.bf16 %v1109_v45, %v1109_v45 }
 0x55c   : > { %v2195_v12 = vld [vmem:[#allocation2 + $0x70] sm:$0xff]  }
 0x55d   : > { %1129 = vst.msk [vmem:[#allocation2 + $0x7c] sm:$0xf] %vm677_vm7, %v2059_v14  ;;  %2136 = vmatprep.mubr.msk.bf16.mxu1 %vm620_vm2, %v2195_v12  ;;  %vm1616_vm7 = vcmask 130048  }
 0x564   : > { %v2196_v48 = vld [vmem:[#allocation2 + $0x78] sm:$0xff]  }
 0x565   : > { %2137 = vmatmul.mubr.msk.bf16.gmra.mxu1 %vm620_vm2, %v2196_v48  ;;  %vm1518_vm2 = vcmask 64512  }
 0x5a1   : > { %v2809_v58 = vpop.f32.mrf.mxu1 }
 0x5a3   : > { %v1359_v46 = vpop.f32.mrf.mxu1 }
 0x5a5   : > { %v2811_v52 = vpop.f32.mrf.mxu1 }
 0x5a7   : > { %v1362_v38 = vpop.f32.mrf.mxu1 }
 0x5a9   : > { %v2813_v56 = vpop.f32.mrf.mxu1 }
 0x5ab   : > { %v2815_v0 = vpop.f32.mrf.mxu1 }
 0x5ad   : > { %v2817_v4 = vpop.f32.mrf.mxu1 }
 0x5af   : > { %v2819_v3 = vpop.f32.mrf.mxu1 }
 0x5b1   : > { %v2821_v21 = vpop.f32.mrf.mxu1 }
 0x5b3   : > { %v2823_v16 = vpop.f32.mrf.mxu1 }
 0x5b5   : > { %v2827_v18 = vpop.f32.mrf.mxu1 }
 0x5b7   : > { %v2829_v23 = vpop.f32.mrf.mxu1 }
 0x5b9   : > { %v2110_v6 = vpop.f32.mrf.mxu0 }
 0x5bb   : > { %v1327_v9 = vpop.f32.mrf.mxu0 }
 0x5bd   : > { %v2825_v27 = vpop.f32.mrf.mxu0 }
 0x5bf   : > { %v1330_v8 = vpop.f32.mrf.mxu0 }
 0x5c1   : > { %v2831_v24 = vpop.f32.mrf.mxu1 }
 0x5c3   : > { %v2833_v28 = vpop.f32.mrf.mxu1 }
 0x5c5   : > { %v2835_v49 = vpop.f32.mrf.mxu1 }
 0x5c7   : > { %v2837_v44 = vpop.f32.mrf.mxu1 }
 0x5c9   : > { %v2114_v2 = vpop.f32.mrf.mxu0 }
 0x5ca   : > { %v1456_v51 = vadd.f32 %v2114_v2, %v2110_v6  ;;  %v1460_v41 = vmax.f32 %v2110_v6, %v2114_v2 }
 0x5cb   : > { %v1343_v55 = vpop.f32.mrf.mxu0 }
 0x5cc   : > { %v1454_v5 = vadd.f32 %v1343_v55, %v1327_v9  ;;  %v1464_v62 = vadd.f32 %v2809_v58, %v1456_v51  ;;  %v1458_v31 = vmax.f32 %v1327_v9, %v1343_v55  ;;  %v1514_v51 = vld [vmem:[%s2930_s8] sm:$0xff] }
 0x5cd   : > { %v2115_v50 = vpop.f32.mrf.mxu0 }
 0x5ce   : > { %v1462_v57 = vadd.f32 %v1454_v5, %v1359_v46  ;;  %v1457_v40 = vadd.f32 %v2115_v50, %v2825_v27  ;;  %v1472_v60 = vadd.f32 %v2813_v56, %v1464_v62  ;;  %v1466_v42 = vmax.f32 %v1458_v31, %v1359_v46 }
 0x5cf   : > { %v1346_v11 = vpop.f32.mrf.mxu0  ;;  %v1461_v48 = vmax.f32 %v2825_v27, %v2115_v50  ;;  %v1468_v46 = vmax.f32 %v1460_v41, %v2809_v58  ;;  %v1517_v50 = vld [vmem:[%s2930_s8 + $0x18] sm:$0xff] }
 0x5d0   : > { %v1455_v59 = vadd.f32 %v1346_v11, %v1330_v8  ;;  %v2839_v1 = vpop.f32.mrf.mxu1  ;;  %v1470_v7 = vadd.f32 %v1462_v57, %v2815_v0  ;;  %v1465_v26 = vadd.f32 %v2811_v52, %v1457_v40  ;;  %v1480_v22 = vadd.f32 %v2821_v21, %v1472_v60  ;;  %v432_v40 = vld [vmem:[%s403_s24 + $0x10] sm:$0xff] }
 0x5d1   : > { %v1459_v63 = vmax.f32 %v1330_v8, %v1346_v11  ;;  %v1474_v6 = vmax.f32 %v1466_v42, %v2815_v0  ;;  %v1476_v58 = vmax.f32 %v1468_v46, %v2813_v56 }
 0x5d2   : > { %v1463_v32 = vadd.f32 %v1455_v59, %v1362_v38  ;;  %v2844_v10 = vpop.f32.mrf.mxu1  ;;  %v1478_v13 = vadd.f32 %v1470_v7, %v2823_v16  ;;  %v1473_v19 = vadd.f32 %v2817_v4, %v1465_v26  ;;  %v1488_v33 = vadd.f32 %v2831_v24, %v1480_v22  ;;  %v430_v59 = vld [vmem:[%s403_s24] sm:$0xff] }
 0x5d3   : > { %v1467_v9 = vmax.f32 %v1459_v63, %v1362_v38  ;;  %v1469_v38 = vmax.f32 %v1461_v48, %v2811_v52  ;;  %v1482_v0 = vmax.f32 %v1474_v6, %v2823_v16  ;;  %v431_v16 = vld [vmem:[%s403_s24 + $0x8] sm:$0xff] }
 0x5d4   : > { %v1471_v17 = vadd.f32 %v1463_v32, %v2819_v3  ;;  %v2850_v54 = vpop.f32.mrf.mxu1  ;;  %v1486_v25 = vadd.f32 %v1478_v13, %v2833_v28  ;;  %v1481_v30 = vadd.f32 %v2827_v18, %v1473_v19  ;;  %v1496_v43 = vadd.f32 %v2839_v1, %v1488_v33  ;;  %v2025_v33 = vld [vmem:[%s2931_s9] ss:$0 sm:$0xff] }
 0x5d5   : > { %v1475_v27 = vmax.f32 %v1467_v9, %v2819_v3  ;;  %v1477_v52 = vmax.f32 %v1469_v38, %v2817_v4  ;;  %v1490_v56 = vmax.f32 %v1482_v0, %v2833_v28 }
 0x5d6   : > { %v1479_v29 = vadd.f32 %v1471_v17, %v2829_v23  ;;  %v2856_v15 = vpop.f32.mrf.mxu1  ;;  %v1494_v34 = vadd.f32 %v1486_v25, %v2844_v10  ;;  %v1489_v36 = vadd.f32 %v2835_v49, %v1481_v30 }
 0x5d7   : > { %v1483_v3 = vmax.f32 %v1475_v27, %v2829_v23  ;;  %v1485_v62 = vmax.f32 %v1477_v52, %v2827_v18  ;;  %v1498_v23 = vmax.f32 %v1490_v56, %v2844_v10 }
 0x5d8   : > { %v1487_v61 = vadd.f32 %v1479_v29, %v2837_v44  ;;  %v1497_v8 = vadd.f32 %v2850_v54, %v1489_v36 }
 0x5d9   : > { %v1491_v7 = vmax.f32 %v1483_v3, %v2837_v44  ;;  %v1493_v28 = vmax.f32 %v1485_v62, %v2835_v49 }
 0x5da   : > { %v1495_v45 = vadd.f32 %v1487_v61, %v2856_v15 }
 0x5db   : > { %v1499_v26 = vmax.f32 %v1491_v7, %v2856_v15  ;;  %v1501_v10 = vmax.f32 %v1493_v28, %v2850_v54 }
 0x625   : > { %v2860_v39 = vpop.f32.mrf.mxu1 }
 0x626   : > { %v1504_v47 = vadd.f32 %v2860_v39, %v1496_v43 }
 0x627   : > { %v1439_v35 = vpop.f32.mrf.mxu1 }
 0x628   : > { %v1502_v37 = vadd.f32 %v1494_v34, %v1439_v35  ;;  %v1512_v11 = vmul.f32 0.125, %v1504_v47  ;;  %v1506_v32 = vmax.f32 %v1498_v23, %v1439_v35 }
 0x629   : > { %v2139_v20 = vpop.f32.mrf.mxu1 }
 0x62a   : > { %v1510_v14 = vmul.f32 0.125, %v1502_v37  ;;  %v1505_v2 = vadd.f32 %v2139_v20, %v1497_v8  ;;  %v1509_v60 = vmax.f32 %v1501_v10, %v2139_v20 }
 0x62b   : > { %v1442_v12 = vpop.f32.mrf.mxu1 }
 0x62c   : > { %v1503_v55 = vadd.f32 %v1495_v45, %v1442_v12  ;;  %2142 = vmatprep.mubr.msk.f32.mxu0 %vm1518_vm2, %v1510_v14  ;;  %v1513_v57 = vmul.f32 0.125, %v1505_v2  ;;  %v1507_v44 = vmax.f32 %v1499_v26, %v1442_v12 }
 0x62e   : > { %v1511_v5 = vmul.f32 0.125, %v1503_v55 }
 0x630   : > { %2143 = vmatmul.mubr.msk.f32.vlgmr.msra.gmra.mxu0 %vm1518_vm2, %v1511_v5 }
 0x631   : > { %2149 = vmatpush3.msra.mxu0 %v2806_v53  ;;  %2145 = vmatprep.mubr.msk.f32.mxu0 %vm1518_vm2, %v1512_v11  ;;  %v1484_v53 = vmax.f32 %v1476_v58, %v2821_v21  ;;  %v433_v21 = vld [vmem:[%s403_s24 + $0x18] sm:$0xff] }
 0x632   : > { %2150 = vmatprep.subr.mxu0 %v1514_v51 }
 0x633   : > { %2151 = vmatpush3.msra.mxu0 %v1514_v51  ;;  %v1492_v4 = vmax.f32 %v1484_v53, %v2831_v24 }
 0x634   : > { %2146 = vmatmul.mubr.msk.f32.gmra.mxu0 %vm1518_vm2, %v1513_v57  ;;  %2158 = vmatprep.subr.mxu0 %v1517_v50 }
 0x635   : > { %2152 = vmatprep.mubr.msk.f32.mxu0 %vm1616_vm7, %v430_v59  ;;  %v1500_v18 = vmax.f32 %v1492_v4, %v2839_v1 }
 0x637   : > { %v1508_v24 = vmax.f32 %v1500_v18, %v2860_v39 }
 0x638   : > { %2153 = vmatmul.mubr.msk.f32.vlgmr.msra.gmra.mxu0 %vm1616_vm7, %v431_v16 }
 0x639   : > { %2159 = vmatpush3.msra.mxu0 %v1517_v50  ;;  %2155 = vmatprep.mubr.msk.f32.mxu0 %vm1616_vm7, %v432_v40 }
 0x63c   : > { %2156 = vmatmul.mubr.msk.f32.gmra.mxu0 %vm1616_vm7, %v433_v21 }
 0x63d   : > { %2160 = vmatprep.mubr.msk.f32.mxu0 %vm1518_vm2, %v1506_v32 }
 0x640   : > { %2161 = vmatmul.mubr.msk.f32.vlgmr.msra.gmra.mxu0 %vm1518_vm2, %v1507_v44 }
 0x641   : > { %2163 = vmatprep.mubr.msk.f32.mxu0 %vm1518_vm2, %v1508_v24 }
 0x644   : > { %2164 = vmatmul.mubr.msk.f32.gmra.mxu0 %vm1518_vm2, %v1509_v60 }
 0x6f0   : > { %v2144_v49 = vpop.f32.mrf.mxu0 }
 0x6f2   : > { %v1597_v17 = vpop.f32.mrf.mxu0 }
 0x6f4   : > { %v2147_v13 = vpop.f32.mrf.mxu0 }
 0x6f6   : > { %v1607_v19 = vpop.f32.mrf.mxu0 }
 0x6f8   : > { %v2154_v22 = vpop.f32.mrf.mxu0 }
 0x6f9   : > { %v1701_v15 = vadd.f32 %v2154_v22, %v2144_v49 }
 0x6fa   : > { %v1695_v1 = vpop.f32.mrf.mxu0 }
 0x6fb   : > { %v1696_v31 = vadd.f32 %v1695_v1, %v1597_v17 }
 0x6fc   : > { %v2157_v25 = vpop.f32.mrf.mxu0 }
 0x6fd   : > { %v1711_v34 = vadd.f32 %v2157_v25, %v2147_v13 }
 0x6fe   : > { %v1705_v29 = vpop.f32.mrf.mxu0 }
 0x6ff   : > { %v1706_v36 = vadd.f32 %v1705_v29, %v1607_v19 }
 0x700   : > { %v2162_v30 = vpop.f32.mrf.mxu0 }
 0x701   : > { %v1812_v54 = vadd.f32 %v2162_v30, %v1701_v15 }
 0x702   : > { %v1792_v39 = vpop.f32.mrf.mxu0 }
 0x703   : > { %v1811_v61 = vadd.f32 %v1792_v39, %v1696_v31  ;;  %v1823_v35 = vadd.f32 %v2025_v33, %v1812_v54 }
 0x704   : > { %v2165_v63 = vpop.f32.mrf.mxu0 }
 0x705   : > { %v1822_v37 = vadd.f32 %v2025_v33, %v1811_v61  ;;  %v1814_v41 = vadd.f32 %v2165_v63, %v1711_v34  ;;  %v1827_v45 = vmax.f32 %v1823_v35, 0.0 }
 0x706   : > { %v1802_v42 = vpop.f32.mrf.mxu0 }
 0x707   : > { %v1826_v43 = vmax.f32 %v1822_v37, 0.0  ;;  %v1813_v20 = vadd.f32 %v1802_v42, %v1706_v36  ;;  %v1825_v14 = vadd.f32 %v2025_v33, %v1814_v41  ;;  %1832 = vst.msk [vmem:[%s427_s11 + $0x8] sm:$0xff] %vm1830_vm14, %v1827_v45 }
 0x709   : > { %1831 = vst.msk [vmem:[%s427_s11] sm:$0xff] %vm1830_vm14, %v1826_v43  ;;  %v1824_v47 = vadd.f32 %v2025_v33, %v1813_v20  ;;  %v1829_v48 = vmax.f32 %v1825_v14, 0.0 }
 0x70b   : > { %v1828_v12 = vmax.f32 %v1824_v47, 0.0  ;;  %1834 = vst.msk [vmem:[%s427_s11 + $0x18] sm:$0xff] %vm1830_vm14, %v1829_v48 }
 0x70d   : > { %1833 = vst.msk [vmem:[%s427_s11 + $0x10] sm:$0xff] %vm1830_vm14, %v1828_v12 }
 0x70e PF: > { %s20_s13 = sadd.s32 1, %s2267_s13  }
 0x70f   : > { %p17_p4 = scmp.ge.s32.totalorder %s20_s13, 4  }
 0x711   :  { %19 = sbr.rel (!%p17_p4) target bundleno = 1 (0x1), region = 99 }

</bundles_post_ra>
